<compile_context>
chip_gen: v7x
topology: tpu7x:2x2x1
jax: 0.10.0
libtpu: 0.0.40
codegen_flags: <defaults>
</compile_context>

<pallas_src>
import math

import jax
import jax.numpy as jnp
from jax.experimental import pallas as pl
from jax.experimental.pallas import tpu as pltpu

PADDING_IDX = 0
LN_EPS = 1e-5
NEG_INF = -1e30

# dot_general dimension numbers for A @ B^T (contract last dims of both operands)
_NT = (((1,), (1,)), ((), ()))


# ----------------------------- in-kernel helpers -----------------------------

def _ln(x, gamma, beta):
    """PyTorch-style LayerNorm over the last axis (biased variance, eps=1e-5)."""
    mu = jnp.mean(x, axis=-1, keepdims=True)
    var = jnp.mean((x - mu) ** 2, axis=-1, keepdims=True)
    return (x - mu) * jax.lax.rsqrt(var + LN_EPS) * gamma + beta


# ----------------------------- fused kernel ----------------------------------
# preproc:  out = layer_norm(relu(layer_norm(conv(fc(x)))))   (conv folded into fc; dropout=id)
# mask:     (sum(out, -1) == padding_idx)                      (same tensor the MLencoder sees)
# layers:   N x [ MHA (+res +LN)  ->  PW-FFN (+res +LN) ]

def _make_fused_kernel(n_layers, n_heads, d_k, d_v, d_model, d_ff):
    HK = n_heads * d_k
    HV = n_heads * d_v
    QKV = 2 * HK + HV
    D = d_model

    def kernel(x_ref, wfc_ref, pre_ref, blk_ref, wqkv_ref, wo_ref, w1_ref, w2_ref,
               lvec_ref, outs_ref, mask_ref, ocat_ref):
        b_fc = pre_ref[0:1, :]
        gamma = pre_ref[1:2, :]
        beta = pre_ref[2:3, :]

        # -------- preprocessing: fc (+ folded CBS LoG conv) -> LN -> relu -> (dropout) -> LN
        xb = x_ref[...].astype(jnp.bfloat16)                              # (BS, d_in)
        h = jnp.dot(xb, wfc_ref[...], preferred_element_type=jnp.float32) + b_fc
        r = jnp.maximum(_ln(h, gamma, beta), 0.0)
        z = _ln(r, gamma, beta)                                           # (BS, D) f32
        bs, d = z.shape

        # -------- padding mask: direct f32 feature-sum == padding_idx (matches reference) ---
        zsum = jnp.sum(z, axis=-1, keepdims=True)                         # (BS, 1) XLU reduce
        pad_flag = jnp.where(zsum == float(PADDING_IDX), 1.0, 0.0)        # exact 0/1, (BS, 1)
        mask_ref[...] = pad_flag
        # Broadcast the exact 0/1 key-padding flag onto the lane (key) axis of the bias:
        # [ones(BS,D) @ (pad*ones(1,D))^T][i,j] = D*pad[j]  -> exactly 0 when key j not padded.
        pad_bcast = pad_flag * jnp.ones((1, d), jnp.float32)
        key_pad = jax.lax.dot_general(jnp.ones((bs, d), jnp.float32), pad_bcast, _NT,
                                      preferred_element_type=jnp.float32)  # (BS, BS)
        # finite -1e30 (not -inf) so fully-masked rows give a uniform softmax, never NaN
        bias = blk_ref[...] + jnp.where(key_pad > 0.5, NEG_INF, 0.0)        # (BS, BS)

        # -------- N encoder layers (static unrolled loop, all weights resident in VMEM) ------
        cur = z
        for n in range(n_layers):
            lv = lvec_ref[n]                         # (8, C) packed per-layer vectors
            b_qkv = lv[0:1, 0:QKV]
            bo = lv[1:2, 0:D]
            g1 = lv[2:3, 0:D]
            be1 = lv[3:4, 0:D]
            b1 = lv[4:5, 0:d_ff]
            b2 = lv[5:6, 0:D]
            g2 = lv[6:7, 0:D]
            be2 = lv[7:8, 0:D]

            cb = cur.astype(jnp.bfloat16)
            # fused Q|K|V projection; 1/sqrt(d_k) pre-folded into the Q slice of wqkv / b_qkv
            qkv = jnp.dot(cb, wqkv_ref[n], preferred_element_type=jnp.float32) + b_qkv
            q = qkv[:, 0:HK]
            k = qkv[:, HK:2 * HK]
            v = qkv[:, 2 * HK:QKV]

            for hh in range(n_heads):                                      # tiny, unrolled
                qh = q[:, hh * d_k:(hh + 1) * d_k].astype(jnp.bfloat16)
                kh = k[:, hh * d_k:(hh + 1) * d_k].astype(jnp.bfloat16)
                vh = v[:, hh * d_v:(hh + 1) * d_v].astype(jnp.bfloat16)
                s = jax.lax.dot_general(qh, kh, _NT,
                                        preferred_element_type=jnp.float32) + bias
                s = s - jnp.max(s, axis=-1, keepdims=True)
                e = jnp.exp(s)
                p = e * pl.reciprocal(jnp.sum(e, axis=-1, keepdims=True), approx=True)
                # write each head at its static lane offset (no lane-concat afterwards)
                ocat_ref[:, hh * d_v:(hh + 1) * d_v] = jnp.dot(
                    p.astype(jnp.bfloat16), vh, preferred_element_type=jnp.float32)

            # single output projection on the concatenated heads (1 MXU push instead of H)
            att = jnp.dot(ocat_ref[...].astype(jnp.bfloat16), wo_ref[n],
                          preferred_element_type=jnp.float32) + bo
            y = _ln(cur + att, g1, be1)                                    # mhatt res + LN

            f = jnp.maximum(jnp.dot(y.astype(jnp.bfloat16), w1_ref[n],
                                    preferred_element_type=jnp.float32) + b1, 0.0)
            f = jnp.dot(f.astype(jnp.bfloat16), w2_ref[n],
                        preferred_element_type=jnp.float32) + b2
            cur = _ln(y + f, g2, be2)                                      # pwff res + LN
            outs_ref[n] = cur

    return kernel


# ----------------------------- one-time parameter packing --------------------

def make_block_bias(B, S):
    """Static block-diagonal additive bias forbidding cross-image attention once the
    batch is flattened to (B*S, ...).  Precompute once per input shape."""
    img = jnp.arange(B * S, dtype=jnp.int32) // S
    return jnp.where(img[:, None] == img[None, :], 0.0, NEG_INF).astype(jnp.float32)


def prepare_encoder_params(params, n_heads, d_k, d_v):
    """Offline (one-time) folding + packing of module parameters into kernel operands."""
    layers = params["layers"]
    D = params["w_fc"].shape[1]
    d_ff = layers[0]["w1"].shape[1]
    HK, HV = n_heads * d_k, n_heads * d_v
    inv = 1.0 / math.sqrt(d_k)

    # Fold the depthwise CBS LoG conv (banded Toeplitz along the feature axis) into fc (linear).
    T = params["toeplitz"]
    w_fc_eff = (params["w_fc"] @ T).astype(jnp.bfloat16)
    b_fc_eff = params["b_fc"] @ T
    pre = jnp.concatenate([b_fc_eff, params["ln_g"], params["ln_b"]], axis=0)  # (3, D) f32

    # Fused Q|K|V projection weights, 1/sqrt(d_k) folded into the Q columns.
    w_qkv = jnp.stack([jnp.concatenate([lp["wq"] * inv, lp["wk"], lp["wv"]], axis=1)
                       for lp in layers]).astype(jnp.bfloat16)          # (N, D, 2HK+HV)
    w_o = jnp.stack([lp["wo"] for lp in layers]).astype(jnp.bfloat16)   # (N, HV, D)
    w1 = jnp.stack([lp["w1"] for lp in layers]).astype(jnp.bfloat16)    # (N, D, d_ff)
    w2 = jnp.stack([lp["w2"] for lp in layers]).astype(jnp.bfloat16)    # (N, d_ff, D)

    # All small per-layer f32 vectors packed into one lane-padded (N, 8, C) slab.
    C = -(-max(2 * HK + HV, d_ff, D) // 128) * 128

    def row(v):
        return jnp.pad(v.astype(jnp.float32), ((0, 0), (0, C - v.shape[1])))

    lvecs = jnp.stack([jnp.concatenate([
        row(jnp.concatenate([lp["bq"] * inv, lp["bk"], lp["bv"]], axis=1)),
        row(lp["bo"]), row(lp["ln1_g"]), row(lp["ln1_b"]),
        row(lp["b1"]), row(lp["b2"]), row(lp["ln2_g"]), row(lp["ln2_b"]),
    ], axis=0) for lp in layers])                                        # (N, 8, C) f32

    return {"w_fc": w_fc_eff, "pre": pre, "w_qkv": w_qkv, "w_o": w_o,
            "w1": w1, "w2": w2, "lvecs": lvecs}


# ----------------------------- per-step wrapper --------------------------------

def memory_augmented_encoder_cbs_forward(x, packed, blk_bias, n_heads, d_k, d_v,
                                         attention_weights=None):
    # TODO(synk): attention_weights multiplicative path not implemented (None in this test).
    B, S, d_in = x.shape
    BS = B * S
    N = packed["w_qkv"].shape[0]
    D = packed["w_fc"].shape[1]
    d_ff = packed["w1"].shape[2]

    kernel = _make_fused_kernel(N, n_heads, d_k, d_v, D, d_ff)
    outs_flat, mask_col = pl.pallas_call(
        kernel,
        out_shape=(jax.ShapeDtypeStruct((N, BS, D), jnp.float32),
                   jax.ShapeDtypeStruct((BS, 1), jnp.float32)),
        scratch_shapes=[pltpu.VMEM((BS, n_heads * d_v), jnp.float32)],
    )(x.reshape(BS, d_in), packed["w_fc"], packed["pre"], blk_bias,
      packed["w_qkv"], packed["w_o"], packed["w1"], packed["w2"], packed["lvecs"])

    outs = jnp.transpose(outs_flat.reshape(N, B, S, D), (1, 0, 2, 3))      # (B, N, S, D)
    attention_mask = (mask_col.reshape(B, S) > 0.5)[:, None, None, :]      # (B, 1, 1, S) bool
    return outs, attention_mask


# ----------------------------- parameter construction -------------------------

def _log_taps(kernel_size, sigma):
    # TODO(synk): get_laplaceOfGaussian_filter_1D source not provided; this is the standard
    # 1-D Laplacian-of-Gaussian tap used by CBS implementations.
    ax = jnp.arange(-(kernel_size // 2), kernel_size // 2 + 1, dtype=jnp.float32)
    return (-(1.0 / (math.pi * sigma ** 4))
            * (1.0 - ax ** 2 / (2.0 * sigma ** 2))
            * jnp.exp(-ax ** 2 / (2.0 * sigma ** 2)))


def _toeplitz_from_taps(taps, D):
    # c = h @ T  <=>  c[j] = sum_k taps[k] * h[j + k - pad]   (Conv1d cross-correlation,
    # zero 'same' padding), so T[i, j] = taps[i - j + pad] on the band.
    K = taps.shape[0]
    pad = K // 2
    i = jnp.arange(D)[:, None]
    j = jnp.arange(D)[None, :]
    idx = i - j + pad
    valid = (idx >= 0) & (idx < K)
    return jnp.where(valid, taps[jnp.clip(idx, 0, K - 1)], 0.0).astype(jnp.float32)


def init_params(key, d_in, d_model, d_k, d_v, n_heads, d_ff, N,
                kernel_size=3, sigma=1.0):
    counter = [0]

    def w(shape, scale=0.05):
        counter[0] += 1
        return jax.random.normal(jax.random.fold_in(key, counter[0]),
                                 shape, jnp.float32) * scale

    params = {
        "w_fc": w((d_in, d_model)),
        "b_fc": w((1, d_model)),
        "ln_g": jnp.ones((1, d_model), jnp.float32),
        "ln_b": jnp.zeros((1, d_model), jnp.float32),
        "toeplitz": _toeplitz_from_taps(_log_taps(kernel_size, sigma), d_model),
        "layers": [],
    }
    for _ in range(N):
        params["layers"].append({
            "wq": w((d_model, n_heads * d_k)), "bq": w((1, n_heads * d_k)),
            "wk": w((d_model, n_heads * d_k)), "bk": w((1, n_heads * d_k)),
            "wv": w((d_model, n_heads * d_v)), "bv": w((1, n_heads * d_v)),
            "wo": w((n_heads * d_v, d_model)), "bo": w((1, d_model)),
            "ln1_g": jnp.ones((1, d_model), jnp.float32),
            "ln1_b": jnp.zeros((1, d_model), jnp.float32),
            "w1": w((d_model, d_ff)), "b1": w((1, d_ff)),
            "w2": w((d_ff, d_model)), "b2": w((1, d_model)),
            "ln2_g": jnp.ones((1, d_model), jnp.float32),
            "ln2_b": jnp.zeros((1, d_model), jnp.float32),
        })
    return params


# ----------------------------- main -------------------------------------------

if __name__ == "__main__":
    # small shapes consistent with the module: S=6 matches the CBS filter's channels=6
    B, S, d_in = 2, 6, 48
    d_model, d_k, d_v, n_heads, d_ff, N = 32, 8, 8, 4, 64, 2

    key = jax.random.PRNGKey(0)
    kx, kp = jax.random.split(key)
    x = jax.random.normal(kx, (B, S, d_in), jnp.float32)
    params = init_params(kp, d_in, d_model, d_k, d_v, n_heads, d_ff, N,
                         kernel_size=3, sigma=1.0)

    # ---- one-time (out-of-jit) parameter packing/folding: NOT on the per-call path ----
    packed = jax.tree_util.tree_map(jax.block_until_ready,
                                    prepare_encoder_params(params, n_heads, d_k, d_v))
    blk_bias = jax.block_until_ready(make_block_bias(B, S))

    fwd = jax.jit(memory_augmented_encoder_cbs_forward,
                  static_argnames=("n_heads", "d_k", "d_v"))
    outs, attention_mask = fwd(x, packed, blk_bias, n_heads=n_heads, d_k=d_k, d_v=d_v)
    jax.block_until_ready(outs)
    jax.block_until_ready(attention_mask)

    assert outs.shape == (B, N, S, d_model), outs.shape
    assert attention_mask.shape == (B, 1, 1, S), attention_mask.shape
    assert bool(jnp.all(jnp.isfinite(outs)))
    print("KERNEL_OK")
</pallas_src>

<mosaic_0001>
module attributes {stable_mosaic.version = 11 : i64} {
  func.func @kernel(%arg0: memref<12x48xf32, #tpu.memory_space<vmem>>, %arg1: memref<48x32xbf16, #tpu.memory_space<vmem>>, %arg2: memref<3x32xf32, #tpu.memory_space<vmem>>, %arg3: memref<12x12xf32, #tpu.memory_space<vmem>>, %arg4: memref<2x32x96xbf16, #tpu.memory_space<vmem>>, %arg5: memref<2x32x32xbf16, #tpu.memory_space<vmem>>, %arg6: memref<2x32x64xbf16, #tpu.memory_space<vmem>>, %arg7: memref<2x64x32xbf16, #tpu.memory_space<vmem>>, %arg8: memref<2x8x128xf32, #tpu.memory_space<vmem>>, %arg9: memref<2x12x32xf32, #tpu.memory_space<vmem>>, %arg10: memref<12x1xf32, #tpu.memory_space<vmem>>, %arg11: memref<12x32xf32, #tpu.memory_space<vmem>>) attributes {dimension_semantics = [], scalar_prefetch = 0 : i64, scratch_operands = 1 : i64, tpu.core_type = #tpu.core_type<tc>} {
    %c0 = arith.constant 0 : index
    %c0_0 = arith.constant 0 : index
    %0 = vector.load %arg2[%c0, %c0_0] : memref<3x32xf32, #tpu.memory_space<vmem>>, vector<1x32xf32>
    %c1 = arith.constant 1 : index
    %c0_1 = arith.constant 0 : index
    %1 = vector.load %arg2[%c1, %c0_1] : memref<3x32xf32, #tpu.memory_space<vmem>>, vector<1x32xf32>
    %c2 = arith.constant 2 : index
    %c0_2 = arith.constant 0 : index
    %2 = vector.load %arg2[%c2, %c0_2] : memref<3x32xf32, #tpu.memory_space<vmem>>, vector<1x32xf32>
    %c0_3 = arith.constant 0 : index
    %c0_4 = arith.constant 0 : index
    %3 = vector.load %arg0[%c0_3, %c0_4] : memref<12x48xf32, #tpu.memory_space<vmem>>, vector<12x48xf32>
    %4 = arith.truncf %3 : vector<12x48xf32> to vector<12x48xbf16>
    %c0_5 = arith.constant 0 : index
    %c0_6 = arith.constant 0 : index
    %5 = vector.load %arg1[%c0_5, %c0_6] : memref<48x32xbf16, #tpu.memory_space<vmem>>, vector<48x32xbf16>
    %cst = arith.constant dense<0.000000e+00> : vector<12x32xf32>
    %6 = tpu.matmul %4, %5, %cst {dimension_numbers = #tpu.dot_dimension_numbers<[1], [0], [0], [1], [0, 0, 1, 1], [], []>} : vector<12x48xbf16>, vector<48x32xbf16>, vector<12x32xf32> -> vector<12x32xf32>
    %7 = vector.broadcast %0 : vector<1x32xf32> to vector<12x32xf32>
    %8 = arith.addf %6, %7 : vector<12x32xf32>
    %cst_7 = arith.constant dense<0.000000e+00> : vector<12xf32>
    %9 = vector.multi_reduction <add>, %8, %cst_7 [1] : vector<12x32xf32> to vector<12xf32>
    %10 = vector.shape_cast %9 : vector<12xf32> to vector<12x1xf32>
    %cst_8 = arith.constant 3.200000e+01 : f32
    %11 = vector.broadcast %cst_8 : f32 to vector<12x1xf32>
    %12 = arith.divf %10, %11 : vector<12x1xf32>
    %13 = vector.broadcast %12 : vector<12x1xf32> to vector<12x32xf32>
    %14 = arith.subf %8, %13 : vector<12x32xf32>
    %15 = arith.mulf %14, %14 : vector<12x32xf32>
    %cst_9 = arith.constant dense<0.000000e+00> : vector<12xf32>
    %16 = vector.multi_reduction <add>, %15, %cst_9 [1] : vector<12x32xf32> to vector<12xf32>
    %17 = vector.shape_cast %16 : vector<12xf32> to vector<12x1xf32>
    %cst_10 = arith.constant 3.200000e+01 : f32
    %18 = vector.broadcast %cst_10 : f32 to vector<12x1xf32>
    %19 = arith.divf %17, %18 : vector<12x1xf32>
    %20 = vector.broadcast %12 : vector<12x1xf32> to vector<12x32xf32>
    %21 = arith.subf %8, %20 : vector<12x32xf32>
    %cst_11 = arith.constant 9.99999974E-6 : f32
    %22 = vector.broadcast %cst_11 : f32 to vector<12x1xf32>
    %23 = arith.addf %19, %22 : vector<12x1xf32>
    %24 = math.rsqrt %23 : vector<12x1xf32>
    %25 = vector.broadcast %24 : vector<12x1xf32> to vector<12x32xf32>
    %26 = arith.mulf %21, %25 : vector<12x32xf32>
    %27 = vector.broadcast %1 : vector<1x32xf32> to vector<12x32xf32>
    %28 = arith.mulf %26, %27 : vector<12x32xf32>
    %29 = vector.broadcast %2 : vector<1x32xf32> to vector<12x32xf32>
    %30 = arith.addf %28, %29 : vector<12x32xf32>
    %cst_12 = arith.constant 0.000000e+00 : f32
    %31 = vector.broadcast %cst_12 : f32 to vector<12x32xf32>
    %32 = arith.maximumf %30, %31 : vector<12x32xf32>
    %cst_13 = arith.constant dense<0.000000e+00> : vector<12xf32>
    %33 = vector.multi_reduction <add>, %32, %cst_13 [1] : vector<12x32xf32> to vector<12xf32>
    %34 = vector.shape_cast %33 : vector<12xf32> to vector<12x1xf32>
    %cst_14 = arith.constant 3.200000e+01 : f32
    %35 = vector.broadcast %cst_14 : f32 to vector<12x1xf32>
    %36 = arith.divf %34, %35 : vector<12x1xf32>
    %37 = vector.broadcast %36 : vector<12x1xf32> to vector<12x32xf32>
    %38 = arith.subf %32, %37 : vector<12x32xf32>
    %39 = arith.mulf %38, %38 : vector<12x32xf32>
    %cst_15 = arith.constant dense<0.000000e+00> : vector<12xf32>
    %40 = vector.multi_reduction <add>, %39, %cst_15 [1] : vector<12x32xf32> to vector<12xf32>
    %41 = vector.shape_cast %40 : vector<12xf32> to vector<12x1xf32>
    %cst_16 = arith.constant 3.200000e+01 : f32
    %42 = vector.broadcast %cst_16 : f32 to vector<12x1xf32>
    %43 = arith.divf %41, %42 : vector<12x1xf32>
    %44 = vector.broadcast %36 : vector<12x1xf32> to vector<12x32xf32>
    %45 = arith.subf %32, %44 : vector<12x32xf32>
    %cst_17 = arith.constant 9.99999974E-6 : f32
    %46 = vector.broadcast %cst_17 : f32 to vector<12x1xf32>
    %47 = arith.addf %43, %46 : vector<12x1xf32>
    %48 = math.rsqrt %47 : vector<12x1xf32>
    %49 = vector.broadcast %48 : vector<12x1xf32> to vector<12x32xf32>
    %50 = arith.mulf %45, %49 : vector<12x32xf32>
    %51 = vector.broadcast %1 : vector<1x32xf32> to vector<12x32xf32>
    %52 = arith.mulf %50, %51 : vector<12x32xf32>
    %53 = vector.broadcast %2 : vector<1x32xf32> to vector<12x32xf32>
    %54 = arith.addf %52, %53 : vector<12x32xf32>
    %cst_18 = arith.constant dense<0.000000e+00> : vector<12xf32>
    %55 = vector.multi_reduction <add>, %54, %cst_18 [1] : vector<12x32xf32> to vector<12xf32>
    %56 = vector.shape_cast %55 : vector<12xf32> to vector<12x1xf32>
    %cst_19 = arith.constant 0.000000e+00 : f32
    %57 = vector.broadcast %cst_19 : f32 to vector<12x1xf32>
    %58 = arith.cmpf oeq, %56, %57 : vector<12x1xf32>
    %cst_20 = arith.constant 1.000000e+00 : f32
    %cst_21 = arith.constant 0.000000e+00 : f32
    %59 = vector.broadcast %cst_20 : f32 to vector<12x1xf32>
    %60 = vector.broadcast %cst_21 : f32 to vector<12x1xf32>
    %61 = arith.select %58, %59, %60 : vector<12x1xi1>, vector<12x1xf32>
    %c0_22 = arith.constant 0 : index
    %c0_23 = arith.constant 0 : index
    %62 = vector.load %arg10[%c0_22, %c0_23] : memref<12x1xf32, #tpu.memory_space<vmem>>, vector<12x1xf32>
    tpu.vector_store %arg10[%c0_22, %c0_23], %61 {strides = array<i32>} : memref<12x1xf32, #tpu.memory_space<vmem>>, vector<12x1xf32>,
    %cst_24 = arith.constant 1.000000e+00 : f32
    %63 = vector.broadcast %cst_24 : f32 to vector<1x32xf32>
    %64 = vector.broadcast %61 : vector<12x1xf32> to vector<12x32xf32>
    %65 = vector.broadcast %63 : vector<1x32xf32> to vector<12x32xf32>
    %66 = arith.mulf %64, %65 : vector<12x32xf32>
    %cst_25 = arith.constant 1.000000e+00 : f32
    %67 = vector.broadcast %cst_25 : f32 to vector<12x32xf32>
    %cst_26 = arith.constant dense<0.000000e+00> : vector<12x12xf32>
    %68 = tpu.matmul %67, %66, %cst_26 {dimension_numbers = #tpu.dot_dimension_numbers<[1], [1], [0], [0], [0, 0, 1, 0], [], []>} : vector<12x32xf32>, vector<12x32xf32>, vector<12x12xf32> -> vector<12x12xf32>
    %c0_27 = arith.constant 0 : index
    %c0_28 = arith.constant 0 : index
    %69 = vector.load %arg3[%c0_27, %c0_28] : memref<12x12xf32, #tpu.memory_space<vmem>>, vector<12x12xf32>
    %cst_29 = arith.constant 5.000000e-01 : f32
    %70 = vector.broadcast %cst_29 : f32 to vector<12x12xf32>
    %71 = arith.cmpf ogt, %68, %70 : vector<12x12xf32>
    %cst_30 = arith.constant -1.000000e+30 : f32
    %cst_31 = arith.constant 0.000000e+00 : f32
    %72 = vector.broadcast %cst_30 : f32 to vector<12x12xf32>
    %73 = vector.broadcast %cst_31 : f32 to vector<12x12xf32>
    %74 = arith.select %71, %72, %73 : vector<12x12xi1>, vector<12x12xf32>
    %75 = arith.addf %69, %74 : vector<12x12xf32>
    %c0_32 = arith.constant 0 : index
    %c0_33 = arith.constant 0 : index
    %c0_34 = arith.constant 0 : index
    %76 = vector.load %arg8[%c0_32, %c0_33, %c0_34] : memref<2x8x128xf32, #tpu.memory_space<vmem>>, vector<1x8x128xf32>
    %77 = vector.shape_cast %76 : vector<1x8x128xf32> to vector<8x128xf32>
    %78 = vector.extract_strided_slice %77 {offsets = [0, 0], sizes = [1, 96], strides = [1, 1]} : vector<8x128xf32> to vector<1x96xf32>
    %79 = vector.extract_strided_slice %77 {offsets = [1, 0], sizes = [1, 32], strides = [1, 1]} : vector<8x128xf32> to vector<1x32xf32>
    %80 = vector.extract_strided_slice %77 {offsets = [2, 0], sizes = [1, 32], strides = [1, 1]} : vector<8x128xf32> to vector<1x32xf32>
    %81 = vector.extract_strided_slice %77 {offsets = [3, 0], sizes = [1, 32], strides = [1, 1]} : vector<8x128xf32> to vector<1x32xf32>
    %82 = vector.extract_strided_slice %77 {offsets = [4, 0], sizes = [1, 64], strides = [1, 1]} : vector<8x128xf32> to vector<1x64xf32>
    %83 = vector.extract_strided_slice %77 {offsets = [5, 0], sizes = [1, 32], strides = [1, 1]} : vector<8x128xf32> to vector<1x32xf32>
    %84 = vector.extract_strided_slice %77 {offsets = [6, 0], sizes = [1, 32], strides = [1, 1]} : vector<8x128xf32> to vector<1x32xf32>
    %85 = vector.extract_strided_slice %77 {offsets = [7, 0], sizes = [1, 32], strides = [1, 1]} : vector<8x128xf32> to vector<1x32xf32>
    %86 = arith.truncf %54 : vector<12x32xf32> to vector<12x32xbf16>
    %c0_35 = arith.constant 0 : index
    %c0_36 = arith.constant 0 : index
    %c0_37 = arith.constant 0 : index
    %87 = vector.load %arg4[%c0_35, %c0_36, %c0_37] : memref<2x32x96xbf16, #tpu.memory_space<vmem>>, vector<1x32x96xbf16>
    %88 = vector.shape_cast %87 : vector<1x32x96xbf16> to vector<32x96xbf16>
    %cst_38 = arith.constant dense<0.000000e+00> : vector<12x96xf32>
    %89 = tpu.matmul %86, %88, %cst_38 {dimension_numbers = #tpu.dot_dimension_numbers<[1], [0], [0], [1], [0, 0, 1, 1], [], []>} : vector<12x32xbf16>, vector<32x96xbf16>, vector<12x96xf32> -> vector<12x96xf32>
    %90 = vector.broadcast %78 : vector<1x96xf32> to vector<12x96xf32>
    %91 = arith.addf %89, %90 : vector<12x96xf32>
    %92 = vector.extract_strided_slice %91 {offsets = [0, 0], sizes = [12, 32], strides = [1, 1]} : vector<12x96xf32> to vector<12x32xf32>
    %93 = vector.extract_strided_slice %91 {offsets = [0, 32], sizes = [12, 32], strides = [1, 1]} : vector<12x96xf32> to vector<12x32xf32>
    %94 = vector.extract_strided_slice %91 {offsets = [0, 64], sizes = [12, 32], strides = [1, 1]} : vector<12x96xf32> to vector<12x32xf32>
    %95 = vector.extract_strided_slice %92 {offsets = [0, 0], sizes = [12, 8], strides = [1, 1]} : vector<12x32xf32> to vector<12x8xf32>
    %96 = arith.truncf %95 : vector<12x8xf32> to vector<12x8xbf16>
    %97 = vector.extract_strided_slice %93 {offsets = [0, 0], sizes = [12, 8], strides = [1, 1]} : vector<12x32xf32> to vector<12x8xf32>
    %98 = arith.truncf %97 : vector<12x8xf32> to vector<12x8xbf16>
    %99 = vector.extract_strided_slice %94 {offsets = [0, 0], sizes = [12, 8], strides = [1, 1]} : vector<12x32xf32> to vector<12x8xf32>
    %100 = arith.truncf %99 : vector<12x8xf32> to vector<12x8xbf16>
    %cst_39 = arith.constant dense<0.000000e+00> : vector<12x12xf32>
    %101 = tpu.matmul %96, %98, %cst_39 {dimension_numbers = #tpu.dot_dimension_numbers<[1], [1], [0], [0], [0, 0, 1, 0], [], []>} : vector<12x8xbf16>, vector<12x8xbf16>, vector<12x12xf32> -> vector<12x12xf32>
    %102 = arith.addf %101, %75 : vector<12x12xf32>
    %cst_40 = arith.constant dense<0xFF800000> : vector<12xf32>
    %103 = vector.multi_reduction <maximumf>, %102, %cst_40 [1] : vector<12x12xf32> to vector<12xf32>
    %104 = vector.shape_cast %103 : vector<12xf32> to vector<12x1xf32>
    %105 = vector.broadcast %104 : vector<12x1xf32> to vector<12x12xf32>
    %106 = arith.subf %102, %105 : vector<12x12xf32>
    %107 = math.exp %106 : vector<12x12xf32>
    %cst_41 = arith.constant dense<0.000000e+00> : vector<12xf32>
    %108 = vector.multi_reduction <add>, %107, %cst_41 [1] : vector<12x12xf32> to vector<12xf32>
    %109 = vector.shape_cast %108 : vector<12xf32> to vector<12x1xf32>
    %110 = tpu.reciprocal %109 {approx = true} : vector<12x1xf32> -> vector<12x1xf32>
    %111 = vector.broadcast %110 : vector<12x1xf32> to vector<12x12xf32>
    %112 = arith.mulf %107, %111 : vector<12x12xf32>
    %113 = arith.truncf %112 : vector<12x12xf32> to vector<12x12xbf16>
    %cst_42 = arith.constant dense<0.000000e+00> : vector<12x8xf32>
    %114 = tpu.matmul %113, %100, %cst_42 {dimension_numbers = #tpu.dot_dimension_numbers<[1], [0], [0], [1], [0, 0, 1, 1], [], []>} : vector<12x12xbf16>, vector<12x8xbf16>, vector<12x8xf32> -> vector<12x8xf32>
    %c0_43 = arith.constant 0 : index
    %c0_44 = arith.constant 0 : index
    %115 = vector.load %arg11[%c0_43, %c0_44] : memref<12x32xf32, #tpu.memory_space<vmem>>, vector<12x8xf32>
    tpu.vector_store %arg11[%c0_43, %c0_44], %114 {strides = array<i32>} : memref<12x32xf32, #tpu.memory_space<vmem>>, vector<12x8xf32>,
    %116 = vector.extract_strided_slice %92 {offsets = [0, 8], sizes = [12, 8], strides = [1, 1]} : vector<12x32xf32> to vector<12x8xf32>
    %117 = arith.truncf %116 : vector<12x8xf32> to vector<12x8xbf16>
    %118 = vector.extract_strided_slice %93 {offsets = [0, 8], sizes = [12, 8], strides = [1, 1]} : vector<12x32xf32> to vector<12x8xf32>
    %119 = arith.truncf %118 : vector<12x8xf32> to vector<12x8xbf16>
    %120 = vector.extract_strided_slice %94 {offsets = [0, 8], sizes = [12, 8], strides = [1, 1]} : vector<12x32xf32> to vector<12x8xf32>
    %121 = arith.truncf %120 : vector<12x8xf32> to vector<12x8xbf16>
    %cst_45 = arith.constant dense<0.000000e+00> : vector<12x12xf32>
    %122 = tpu.matmul %117, %119, %cst_45 {dimension_numbers = #tpu.dot_dimension_numbers<[1], [1], [0], [0], [0, 0, 1, 0], [], []>} : vector<12x8xbf16>, vector<12x8xbf16>, vector<12x12xf32> -> vector<12x12xf32>
    %123 = arith.addf %122, %75 : vector<12x12xf32>
    %cst_46 = arith.constant dense<0xFF800000> : vector<12xf32>
    %124 = vector.multi_reduction <maximumf>, %123, %cst_46 [1] : vector<12x12xf32> to vector<12xf32>
    %125 = vector.shape_cast %124 : vector<12xf32> to vector<12x1xf32>
    %126 = vector.broadcast %125 : vector<12x1xf32> to vector<12x12xf32>
    %127 = arith.subf %123, %126 : vector<12x12xf32>
    %128 = math.exp %127 : vector<12x12xf32>
    %cst_47 = arith.constant dense<0.000000e+00> : vector<12xf32>
    %129 = vector.multi_reduction <add>, %128, %cst_47 [1] : vector<12x12xf32> to vector<12xf32>
    %130 = vector.shape_cast %129 : vector<12xf32> to vector<12x1xf32>
    %131 = tpu.reciprocal %130 {approx = true} : vector<12x1xf32> -> vector<12x1xf32>
    %132 = vector.broadcast %131 : vector<12x1xf32> to vector<12x12xf32>
    %133 = arith.mulf %128, %132 : vector<12x12xf32>
    %134 = arith.truncf %133 : vector<12x12xf32> to vector<12x12xbf16>
    %cst_48 = arith.constant dense<0.000000e+00> : vector<12x8xf32>
    %135 = tpu.matmul %134, %121, %cst_48 {dimension_numbers = #tpu.dot_dimension_numbers<[1], [0], [0], [1], [0, 0, 1, 1], [], []>} : vector<12x12xbf16>, vector<12x8xbf16>, vector<12x8xf32> -> vector<12x8xf32>
    %c0_49 = arith.constant 0 : index
    %c8 = arith.constant 8 : index
    %136 = vector.load %arg11[%c0_49, %c8] : memref<12x32xf32, #tpu.memory_space<vmem>>, vector<12x8xf32>
    tpu.vector_store %arg11[%c0_49, %c8], %135 {strides = array<i32>} : memref<12x32xf32, #tpu.memory_space<vmem>>, vector<12x8xf32>,
    %137 = vector.extract_strided_slice %92 {offsets = [0, 16], sizes = [12, 8], strides = [1, 1]} : vector<12x32xf32> to vector<12x8xf32>
    %138 = arith.truncf %137 : vector<12x8xf32> to vector<12x8xbf16>
    %139 = vector.extract_strided_slice %93 {offsets = [0, 16], sizes = [12, 8], strides = [1, 1]} : vector<12x32xf32> to vector<12x8xf32>
    %140 = arith.truncf %139 : vector<12x8xf32> to vector<12x8xbf16>
    %141 = vector.extract_strided_slice %94 {offsets = [0, 16], sizes = [12, 8], strides = [1, 1]} : vector<12x32xf32> to vector<12x8xf32>
    %142 = arith.truncf %141 : vector<12x8xf32> to vector<12x8xbf16>
    %cst_50 = arith.constant dense<0.000000e+00> : vector<12x12xf32>
    %143 = tpu.matmul %138, %140, %cst_50 {dimension_numbers = #tpu.dot_dimension_numbers<[1], [1], [0], [0], [0, 0, 1, 0], [], []>} : vector<12x8xbf16>, vector<12x8xbf16>, vector<12x12xf32> -> vector<12x12xf32>
    %144 = arith.addf %143, %75 : vector<12x12xf32>
    %cst_51 = arith.constant dense<0xFF800000> : vector<12xf32>
    %145 = vector.multi_reduction <maximumf>, %144, %cst_51 [1] : vector<12x12xf32> to vector<12xf32>
    %146 = vector.shape_cast %145 : vector<12xf32> to vector<12x1xf32>
    %147 = vector.broadcast %146 : vector<12x1xf32> to vector<12x12xf32>
    %148 = arith.subf %144, %147 : vector<12x12xf32>
    %149 = math.exp %148 : vector<12x12xf32>
    %cst_52 = arith.constant dense<0.000000e+00> : vector<12xf32>
    %150 = vector.multi_reduction <add>, %149, %cst_52 [1] : vector<12x12xf32> to vector<12xf32>
    %151 = vector.shape_cast %150 : vector<12xf32> to vector<12x1xf32>
    %152 = tpu.reciprocal %151 {approx = true} : vector<12x1xf32> -> vector<12x1xf32>
    %153 = vector.broadcast %152 : vector<12x1xf32> to vector<12x12xf32>
    %154 = arith.mulf %149, %153 : vector<12x12xf32>
    %155 = arith.truncf %154 : vector<12x12xf32> to vector<12x12xbf16>
    %cst_53 = arith.constant dense<0.000000e+00> : vector<12x8xf32>
    %156 = tpu.matmul %155, %142, %cst_53 {dimension_numbers = #tpu.dot_dimension_numbers<[1], [0], [0], [1], [0, 0, 1, 1], [], []>} : vector<12x12xbf16>, vector<12x8xbf16>, vector<12x8xf32> -> vector<12x8xf32>
    %c0_54 = arith.constant 0 : index
    %c16 = arith.constant 16 : index
    %157 = vector.load %arg11[%c0_54, %c16] : memref<12x32xf32, #tpu.memory_space<vmem>>, vector<12x8xf32>
    tpu.vector_store %arg11[%c0_54, %c16], %156 {strides = array<i32>} : memref<12x32xf32, #tpu.memory_space<vmem>>, vector<12x8xf32>,
    %158 = vector.extract_strided_slice %92 {offsets = [0, 24], sizes = [12, 8], strides = [1, 1]} : vector<12x32xf32> to vector<12x8xf32>
    %159 = arith.truncf %158 : vector<12x8xf32> to vector<12x8xbf16>
    %160 = vector.extract_strided_slice %93 {offsets = [0, 24], sizes = [12, 8], strides = [1, 1]} : vector<12x32xf32> to vector<12x8xf32>
    %161 = arith.truncf %160 : vector<12x8xf32> to vector<12x8xbf16>
    %162 = vector.extract_strided_slice %94 {offsets = [0, 24], sizes = [12, 8], strides = [1, 1]} : vector<12x32xf32> to vector<12x8xf32>
    %163 = arith.truncf %162 : vector<12x8xf32> to vector<12x8xbf16>
    %cst_55 = arith.constant dense<0.000000e+00> : vector<12x12xf32>
    %164 = tpu.matmul %159, %161, %cst_55 {dimension_numbers = #tpu.dot_dimension_numbers<[1], [1], [0], [0], [0, 0, 1, 0], [], []>} : vector<12x8xbf16>, vector<12x8xbf16>, vector<12x12xf32> -> vector<12x12xf32>
    %165 = arith.addf %164, %75 : vector<12x12xf32>
    %cst_56 = arith.constant dense<0xFF800000> : vector<12xf32>
    %166 = vector.multi_reduction <maximumf>, %165, %cst_56 [1] : vector<12x12xf32> to vector<12xf32>
    %167 = vector.shape_cast %166 : vector<12xf32> to vector<12x1xf32>
    %168 = vector.broadcast %167 : vector<12x1xf32> to vector<12x12xf32>
    %169 = arith.subf %165, %168 : vector<12x12xf32>
    %170 = math.exp %169 : vector<12x12xf32>
    %cst_57 = arith.constant dense<0.000000e+00> : vector<12xf32>
    %171 = vector.multi_reduction <add>, %170, %cst_57 [1] : vector<12x12xf32> to vector<12xf32>
    %172 = vector.shape_cast %171 : vector<12xf32> to vector<12x1xf32>
    %173 = tpu.reciprocal %172 {approx = true} : vector<12x1xf32> -> vector<12x1xf32>
    %174 = vector.broadcast %173 : vector<12x1xf32> to vector<12x12xf32>
    %175 = arith.mulf %170, %174 : vector<12x12xf32>
    %176 = arith.truncf %175 : vector<12x12xf32> to vector<12x12xbf16>
    %cst_58 = arith.constant dense<0.000000e+00> : vector<12x8xf32>
    %177 = tpu.matmul %176, %163, %cst_58 {dimension_numbers = #tpu.dot_dimension_numbers<[1], [0], [0], [1], [0, 0, 1, 1], [], []>} : vector<12x12xbf16>, vector<12x8xbf16>, vector<12x8xf32> -> vector<12x8xf32>
    %c0_59 = arith.constant 0 : index
    %c24 = arith.constant 24 : index
    %178 = vector.load %arg11[%c0_59, %c24] : memref<12x32xf32, #tpu.memory_space<vmem>>, vector<12x8xf32>
    tpu.vector_store %arg11[%c0_59, %c24], %177 {strides = array<i32>} : memref<12x32xf32, #tpu.memory_space<vmem>>, vector<12x8xf32>,
    %c0_60 = arith.constant 0 : index
    %c0_61 = arith.constant 0 : index
    %179 = vector.load %arg11[%c0_60, %c0_61] : memref<12x32xf32, #tpu.memory_space<vmem>>, vector<12x32xf32>
    %180 = arith.truncf %179 : vector<12x32xf32> to vector<12x32xbf16>
    %c0_62 = arith.constant 0 : index
    %c0_63 = arith.constant 0 : index
    %c0_64 = arith.constant 0 : index
    %181 = vector.load %arg5[%c0_62, %c0_63, %c0_64] : memref<2x32x32xbf16, #tpu.memory_space<vmem>>, vector<1x32x32xbf16>
    %182 = vector.shape_cast %181 : vector<1x32x32xbf16> to vector<32x32xbf16>
    %cst_65 = arith.constant dense<0.000000e+00> : vector<12x32xf32>
    %183 = tpu.matmul %180, %182, %cst_65 {dimension_numbers = #tpu.dot_dimension_numbers<[1], [0], [0], [1], [0, 0, 1, 1], [], []>} : vector<12x32xbf16>, vector<32x32xbf16>, vector<12x32xf32> -> vector<12x32xf32>
    %184 = vector.broadcast %79 : vector<1x32xf32> to vector<12x32xf32>
    %185 = arith.addf %183, %184 : vector<12x32xf32>
    %186 = arith.addf %54, %185 : vector<12x32xf32>
    %cst_66 = arith.constant dense<0.000000e+00> : vector<12xf32>
    %187 = vector.multi_reduction <add>, %186, %cst_66 [1] : vector<12x32xf32> to vector<12xf32>
    %188 = vector.shape_cast %187 : vector<12xf32> to vector<12x1xf32>
    %cst_67 = arith.constant 3.200000e+01 : f32
    %189 = vector.broadcast %cst_67 : f32 to vector<12x1xf32>
    %190 = arith.divf %188, %189 : vector<12x1xf32>
    %191 = vector.broadcast %190 : vector<12x1xf32> to vector<12x32xf32>
    %192 = arith.subf %186, %191 : vector<12x32xf32>
    %193 = arith.mulf %192, %192 : vector<12x32xf32>
    %cst_68 = arith.constant dense<0.000000e+00> : vector<12xf32>
    %194 = vector.multi_reduction <add>, %193, %cst_68 [1] : vector<12x32xf32> to vector<12xf32>
    %195 = vector.shape_cast %194 : vector<12xf32> to vector<12x1xf32>
    %cst_69 = arith.constant 3.200000e+01 : f32
    %196 = vector.broadcast %cst_69 : f32 to vector<12x1xf32>
    %197 = arith.divf %195, %196 : vector<12x1xf32>
    %198 = vector.broadcast %190 : vector<12x1xf32> to vector<12x32xf32>
    %199 = arith.subf %186, %198 : vector<12x32xf32>
    %cst_70 = arith.constant 9.99999974E-6 : f32
    %200 = vector.broadcast %cst_70 : f32 to vector<12x1xf32>
    %201 = arith.addf %197, %200 : vector<12x1xf32>
    %202 = math.rsqrt %201 : vector<12x1xf32>
    %203 = vector.broadcast %202 : vector<12x1xf32> to vector<12x32xf32>
    %204 = arith.mulf %199, %203 : vector<12x32xf32>
    %205 = vector.broadcast %80 : vector<1x32xf32> to vector<12x32xf32>
    %206 = arith.mulf %204, %205 : vector<12x32xf32>
    %207 = vector.broadcast %81 : vector<1x32xf32> to vector<12x32xf32>
    %208 = arith.addf %206, %207 : vector<12x32xf32>
    %209 = arith.truncf %208 : vector<12x32xf32> to vector<12x32xbf16>
    %c0_71 = arith.constant 0 : index
    %c0_72 = arith.constant 0 : index
    %c0_73 = arith.constant 0 : index
    %210 = vector.load %arg6[%c0_71, %c0_72, %c0_73] : memref<2x32x64xbf16, #tpu.memory_space<vmem>>, vector<1x32x64xbf16>
    %211 = vector.shape_cast %210 : vector<1x32x64xbf16> to vector<32x64xbf16>
    %cst_74 = arith.constant dense<0.000000e+00> : vector<12x64xf32>
    %212 = tpu.matmul %209, %211, %cst_74 {dimension_numbers = #tpu.dot_dimension_numbers<[1], [0], [0], [1], [0, 0, 1, 1], [], []>} : vector<12x32xbf16>, vector<32x64xbf16>, vector<12x64xf32> -> vector<12x64xf32>
    %213 = vector.broadcast %82 : vector<1x64xf32> to vector<12x64xf32>
    %214 = arith.addf %212, %213 : vector<12x64xf32>
    %cst_75 = arith.constant 0.000000e+00 : f32
    %215 = vector.broadcast %cst_75 : f32 to vector<12x64xf32>
    %216 = arith.maximumf %214, %215 : vector<12x64xf32>
    %217 = arith.truncf %216 : vector<12x64xf32> to vector<12x64xbf16>
    %c0_76 = arith.constant 0 : index
    %c0_77 = arith.constant 0 : index
    %c0_78 = arith.constant 0 : index
    %218 = vector.load %arg7[%c0_76, %c0_77, %c0_78] : memref<2x64x32xbf16, #tpu.memory_space<vmem>>, vector<1x64x32xbf16>
    %219 = vector.shape_cast %218 : vector<1x64x32xbf16> to vector<64x32xbf16>
    %cst_79 = arith.constant dense<0.000000e+00> : vector<12x32xf32>
    %220 = tpu.matmul %217, %219, %cst_79 {dimension_numbers = #tpu.dot_dimension_numbers<[1], [0], [0], [1], [0, 0, 1, 1], [], []>} : vector<12x64xbf16>, vector<64x32xbf16>, vector<12x32xf32> -> vector<12x32xf32>
    %221 = vector.broadcast %83 : vector<1x32xf32> to vector<12x32xf32>
    %222 = arith.addf %220, %221 : vector<12x32xf32>
    %223 = arith.addf %208, %222 : vector<12x32xf32>
    %cst_80 = arith.constant dense<0.000000e+00> : vector<12xf32>
    %224 = vector.multi_reduction <add>, %223, %cst_80 [1] : vector<12x32xf32> to vector<12xf32>
    %225 = vector.shape_cast %224 : vector<12xf32> to vector<12x1xf32>
    %cst_81 = arith.constant 3.200000e+01 : f32
    %226 = vector.broadcast %cst_81 : f32 to vector<12x1xf32>
    %227 = arith.divf %225, %226 : vector<12x1xf32>
    %228 = vector.broadcast %227 : vector<12x1xf32> to vector<12x32xf32>
    %229 = arith.subf %223, %228 : vector<12x32xf32>
    %230 = arith.mulf %229, %229 : vector<12x32xf32>
    %cst_82 = arith.constant dense<0.000000e+00> : vector<12xf32>
    %231 = vector.multi_reduction <add>, %230, %cst_82 [1] : vector<12x32xf32> to vector<12xf32>
    %232 = vector.shape_cast %231 : vector<12xf32> to vector<12x1xf32>
    %cst_83 = arith.constant 3.200000e+01 : f32
    %233 = vector.broadcast %cst_83 : f32 to vector<12x1xf32>
    %234 = arith.divf %232, %233 : vector<12x1xf32>
    %235 = vector.broadcast %227 : vector<12x1xf32> to vector<12x32xf32>
    %236 = arith.subf %223, %235 : vector<12x32xf32>
    %cst_84 = arith.constant 9.99999974E-6 : f32
    %237 = vector.broadcast %cst_84 : f32 to vector<12x1xf32>
    %238 = arith.addf %234, %237 : vector<12x1xf32>
    %239 = math.rsqrt %238 : vector<12x1xf32>
    %240 = vector.broadcast %239 : vector<12x1xf32> to vector<12x32xf32>
    %241 = arith.mulf %236, %240 : vector<12x32xf32>
    %242 = vector.broadcast %84 : vector<1x32xf32> to vector<12x32xf32>
    %243 = arith.mulf %241, %242 : vector<12x32xf32>
    %244 = vector.broadcast %85 : vector<1x32xf32> to vector<12x32xf32>
    %245 = arith.addf %243, %244 : vector<12x32xf32>
    %c0_85 = arith.constant 0 : index
    %c0_86 = arith.constant 0 : index
    %c0_87 = arith.constant 0 : index
    %246 = vector.load %arg9[%c0_85, %c0_86, %c0_87] : memref<2x12x32xf32, #tpu.memory_space<vmem>>, vector<1x12x32xf32>
    %247 = vector.shape_cast %246 : vector<1x12x32xf32> to vector<12x32xf32>
    %248 = vector.shape_cast %245 : vector<12x32xf32> to vector<1x12x32xf32>
    tpu.vector_store %arg9[%c0_85, %c0_86, %c0_87], %248 {strides = array<i32>} : memref<2x12x32xf32, #tpu.memory_space<vmem>>, vector<1x12x32xf32>,
    %c1_88 = arith.constant 1 : index
    %c0_89 = arith.constant 0 : index
    %c0_90 = arith.constant 0 : index
    %249 = vector.load %arg8[%c1_88, %c0_89, %c0_90] : memref<2x8x128xf32, #tpu.memory_space<vmem>>, vector<1x8x128xf32>
    %250 = vector.shape_cast %249 : vector<1x8x128xf32> to vector<8x128xf32>
    %251 = vector.extract_strided_slice %250 {offsets = [0, 0], sizes = [1, 96], strides = [1, 1]} : vector<8x128xf32> to vector<1x96xf32>
    %252 = vector.extract_strided_slice %250 {offsets = [1, 0], sizes = [1, 32], strides = [1, 1]} : vector<8x128xf32> to vector<1x32xf32>
    %253 = vector.extract_strided_slice %250 {offsets = [2, 0], sizes = [1, 32], strides = [1, 1]} : vector<8x128xf32> to vector<1x32xf32>
    %254 = vector.extract_strided_slice %250 {offsets = [3, 0], sizes = [1, 32], strides = [1, 1]} : vector<8x128xf32> to vector<1x32xf32>
    %255 = vector.extract_strided_slice %250 {offsets = [4, 0], sizes = [1, 64], strides = [1, 1]} : vector<8x128xf32> to vector<1x64xf32>
    %256 = vector.extract_strided_slice %250 {offsets = [5, 0], sizes = [1, 32], strides = [1, 1]} : vector<8x128xf32> to vector<1x32xf32>
    %257 = vector.extract_strided_slice %250 {offsets = [6, 0], sizes = [1, 32], strides = [1, 1]} : vector<8x128xf32> to vector<1x32xf32>
    %258 = vector.extract_strided_slice %250 {offsets = [7, 0], sizes = [1, 32], strides = [1, 1]} : vector<8x128xf32> to vector<1x32xf32>
    %259 = arith.truncf %245 : vector<12x32xf32> to vector<12x32xbf16>
    %c1_91 = arith.constant 1 : index
    %c0_92 = arith.constant 0 : index
    %c0_93 = arith.constant 0 : index
    %260 = vector.load %arg4[%c1_91, %c0_92, %c0_93] : memref<2x32x96xbf16, #tpu.memory_space<vmem>>, vector<1x32x96xbf16>
    %261 = vector.shape_cast %260 : vector<1x32x96xbf16> to vector<32x96xbf16>
    %cst_94 = arith.constant dense<0.000000e+00> : vector<12x96xf32>
    %262 = tpu.matmul %259, %261, %cst_94 {dimension_numbers = #tpu.dot_dimension_numbers<[1], [0], [0], [1], [0, 0, 1, 1], [], []>} : vector<12x32xbf16>, vector<32x96xbf16>, vector<12x96xf32> -> vector<12x96xf32>
    %263 = vector.broadcast %251 : vector<1x96xf32> to vector<12x96xf32>
    %264 = arith.addf %262, %263 : vector<12x96xf32>
    %265 = vector.extract_strided_slice %264 {offsets = [0, 0], sizes = [12, 32], strides = [1, 1]} : vector<12x96xf32> to vector<12x32xf32>
    %266 = vector.extract_strided_slice %264 {offsets = [0, 32], sizes = [12, 32], strides = [1, 1]} : vector<12x96xf32> to vector<12x32xf32>
    %267 = vector.extract_strided_slice %264 {offsets = [0, 64], sizes = [12, 32], strides = [1, 1]} : vector<12x96xf32> to vector<12x32xf32>
    %268 = vector.extract_strided_slice %265 {offsets = [0, 0], sizes = [12, 8], strides = [1, 1]} : vector<12x32xf32> to vector<12x8xf32>
    %269 = arith.truncf %268 : vector<12x8xf32> to vector<12x8xbf16>
    %270 = vector.extract_strided_slice %266 {offsets = [0, 0], sizes = [12, 8], strides = [1, 1]} : vector<12x32xf32> to vector<12x8xf32>
    %271 = arith.truncf %270 : vector<12x8xf32> to vector<12x8xbf16>
    %272 = vector.extract_strided_slice %267 {offsets = [0, 0], sizes = [12, 8], strides = [1, 1]} : vector<12x32xf32> to vector<12x8xf32>
    %273 = arith.truncf %272 : vector<12x8xf32> to vector<12x8xbf16>
    %cst_95 = arith.constant dense<0.000000e+00> : vector<12x12xf32>
    %274 = tpu.matmul %269, %271, %cst_95 {dimension_numbers = #tpu.dot_dimension_numbers<[1], [1], [0], [0], [0, 0, 1, 0], [], []>} : vector<12x8xbf16>, vector<12x8xbf16>, vector<12x12xf32> -> vector<12x12xf32>
    %275 = arith.addf %274, %75 : vector<12x12xf32>
    %cst_96 = arith.constant dense<0xFF800000> : vector<12xf32>
    %276 = vector.multi_reduction <maximumf>, %275, %cst_96 [1] : vector<12x12xf32> to vector<12xf32>
    %277 = vector.shape_cast %276 : vector<12xf32> to vector<12x1xf32>
    %278 = vector.broadcast %277 : vector<12x1xf32> to vector<12x12xf32>
    %279 = arith.subf %275, %278 : vector<12x12xf32>
    %280 = math.exp %279 : vector<12x12xf32>
    %cst_97 = arith.constant dense<0.000000e+00> : vector<12xf32>
    %281 = vector.multi_reduction <add>, %280, %cst_97 [1] : vector<12x12xf32> to vector<12xf32>
    %282 = vector.shape_cast %281 : vector<12xf32> to vector<12x1xf32>
    %283 = tpu.reciprocal %282 {approx = true} : vector<12x1xf32> -> vector<12x1xf32>
    %284 = vector.broadcast %283 : vector<12x1xf32> to vector<12x12xf32>
    %285 = arith.mulf %280, %284 : vector<12x12xf32>
    %286 = arith.truncf %285 : vector<12x12xf32> to vector<12x12xbf16>
    %cst_98 = arith.constant dense<0.000000e+00> : vector<12x8xf32>
    %287 = tpu.matmul %286, %273, %cst_98 {dimension_numbers = #tpu.dot_dimension_numbers<[1], [0], [0], [1], [0, 0, 1, 1], [], []>} : vector<12x12xbf16>, vector<12x8xbf16>, vector<12x8xf32> -> vector<12x8xf32>
    %c0_99 = arith.constant 0 : index
    %c0_100 = arith.constant 0 : index
    %288 = vector.load %arg11[%c0_99, %c0_100] : memref<12x32xf32, #tpu.memory_space<vmem>>, vector<12x8xf32>
    tpu.vector_store %arg11[%c0_99, %c0_100], %287 {strides = array<i32>} : memref<12x32xf32, #tpu.memory_space<vmem>>, vector<12x8xf32>,
    %289 = vector.extract_strided_slice %265 {offsets = [0, 8], sizes = [12, 8], strides = [1, 1]} : vector<12x32xf32> to vector<12x8xf32>
    %290 = arith.truncf %289 : vector<12x8xf32> to vector<12x8xbf16>
    %291 = vector.extract_strided_slice %266 {offsets = [0, 8], sizes = [12, 8], strides = [1, 1]} : vector<12x32xf32> to vector<12x8xf32>
    %292 = arith.truncf %291 : vector<12x8xf32> to vector<12x8xbf16>
    %293 = vector.extract_strided_slice %267 {offsets = [0, 8], sizes = [12, 8], strides = [1, 1]} : vector<12x32xf32> to vector<12x8xf32>
    %294 = arith.truncf %293 : vector<12x8xf32> to vector<12x8xbf16>
    %cst_101 = arith.constant dense<0.000000e+00> : vector<12x12xf32>
    %295 = tpu.matmul %290, %292, %cst_101 {dimension_numbers = #tpu.dot_dimension_numbers<[1], [1], [0], [0], [0, 0, 1, 0], [], []>} : vector<12x8xbf16>, vector<12x8xbf16>, vector<12x12xf32> -> vector<12x12xf32>
    %296 = arith.addf %295, %75 : vector<12x12xf32>
    %cst_102 = arith.constant dense<0xFF800000> : vector<12xf32>
    %297 = vector.multi_reduction <maximumf>, %296, %cst_102 [1] : vector<12x12xf32> to vector<12xf32>
    %298 = vector.shape_cast %297 : vector<12xf32> to vector<12x1xf32>
    %299 = vector.broadcast %298 : vector<12x1xf32> to vector<12x12xf32>
    %300 = arith.subf %296, %299 : vector<12x12xf32>
    %301 = math.exp %300 : vector<12x12xf32>
    %cst_103 = arith.constant dense<0.000000e+00> : vector<12xf32>
    %302 = vector.multi_reduction <add>, %301, %cst_103 [1] : vector<12x12xf32> to vector<12xf32>
    %303 = vector.shape_cast %302 : vector<12xf32> to vector<12x1xf32>
    %304 = tpu.reciprocal %303 {approx = true} : vector<12x1xf32> -> vector<12x1xf32>
    %305 = vector.broadcast %304 : vector<12x1xf32> to vector<12x12xf32>
    %306 = arith.mulf %301, %305 : vector<12x12xf32>
    %307 = arith.truncf %306 : vector<12x12xf32> to vector<12x12xbf16>
    %cst_104 = arith.constant dense<0.000000e+00> : vector<12x8xf32>
    %308 = tpu.matmul %307, %294, %cst_104 {dimension_numbers = #tpu.dot_dimension_numbers<[1], [0], [0], [1], [0, 0, 1, 1], [], []>} : vector<12x12xbf16>, vector<12x8xbf16>, vector<12x8xf32> -> vector<12x8xf32>
    %c0_105 = arith.constant 0 : index
    %c8_106 = arith.constant 8 : index
    %309 = vector.load %arg11[%c0_105, %c8_106] : memref<12x32xf32, #tpu.memory_space<vmem>>, vector<12x8xf32>
    tpu.vector_store %arg11[%c0_105, %c8_106], %308 {strides = array<i32>} : memref<12x32xf32, #tpu.memory_space<vmem>>, vector<12x8xf32>,
    %310 = vector.extract_strided_slice %265 {offsets = [0, 16], sizes = [12, 8], strides = [1, 1]} : vector<12x32xf32> to vector<12x8xf32>
    %311 = arith.truncf %310 : vector<12x8xf32> to vector<12x8xbf16>
    %312 = vector.extract_strided_slice %266 {offsets = [0, 16], sizes = [12, 8], strides = [1, 1]} : vector<12x32xf32> to vector<12x8xf32>
    %313 = arith.truncf %312 : vector<12x8xf32> to vector<12x8xbf16>
    %314 = vector.extract_strided_slice %267 {offsets = [0, 16], sizes = [12, 8], strides = [1, 1]} : vector<12x32xf32> to vector<12x8xf32>
    %315 = arith.truncf %314 : vector<12x8xf32> to vector<12x8xbf16>
    %cst_107 = arith.constant dense<0.000000e+00> : vector<12x12xf32>
    %316 = tpu.matmul %311, %313, %cst_107 {dimension_numbers = #tpu.dot_dimension_numbers<[1], [1], [0], [0], [0, 0, 1, 0], [], []>} : vector<12x8xbf16>, vector<12x8xbf16>, vector<12x12xf32> -> vector<12x12xf32>
    %317 = arith.addf %316, %75 : vector<12x12xf32>
    %cst_108 = arith.constant dense<0xFF800000> : vector<12xf32>
    %318 = vector.multi_reduction <maximumf>, %317, %cst_108 [1] : vector<12x12xf32> to vector<12xf32>
    %319 = vector.shape_cast %318 : vector<12xf32> to vector<12x1xf32>
    %320 = vector.broadcast %319 : vector<12x1xf32> to vector<12x12xf32>
    %321 = arith.subf %317, %320 : vector<12x12xf32>
    %322 = math.exp %321 : vector<12x12xf32>
    %cst_109 = arith.constant dense<0.000000e+00> : vector<12xf32>
    %323 = vector.multi_reduction <add>, %322, %cst_109 [1] : vector<12x12xf32> to vector<12xf32>
    %324 = vector.shape_cast %323 : vector<12xf32> to vector<12x1xf32>
    %325 = tpu.reciprocal %324 {approx = true} : vector<12x1xf32> -> vector<12x1xf32>
    %326 = vector.broadcast %325 : vector<12x1xf32> to vector<12x12xf32>
    %327 = arith.mulf %322, %326 : vector<12x12xf32>
    %328 = arith.truncf %327 : vector<12x12xf32> to vector<12x12xbf16>
    %cst_110 = arith.constant dense<0.000000e+00> : vector<12x8xf32>
    %329 = tpu.matmul %328, %315, %cst_110 {dimension_numbers = #tpu.dot_dimension_numbers<[1], [0], [0], [1], [0, 0, 1, 1], [], []>} : vector<12x12xbf16>, vector<12x8xbf16>, vector<12x8xf32> -> vector<12x8xf32>
    %c0_111 = arith.constant 0 : index
    %c16_112 = arith.constant 16 : index
    %330 = vector.load %arg11[%c0_111, %c16_112] : memref<12x32xf32, #tpu.memory_space<vmem>>, vector<12x8xf32>
    tpu.vector_store %arg11[%c0_111, %c16_112], %329 {strides = array<i32>} : memref<12x32xf32, #tpu.memory_space<vmem>>, vector<12x8xf32>,
    %331 = vector.extract_strided_slice %265 {offsets = [0, 24], sizes = [12, 8], strides = [1, 1]} : vector<12x32xf32> to vector<12x8xf32>
    %332 = arith.truncf %331 : vector<12x8xf32> to vector<12x8xbf16>
    %333 = vector.extract_strided_slice %266 {offsets = [0, 24], sizes = [12, 8], strides = [1, 1]} : vector<12x32xf32> to vector<12x8xf32>
    %334 = arith.truncf %333 : vector<12x8xf32> to vector<12x8xbf16>
    %335 = vector.extract_strided_slice %267 {offsets = [0, 24], sizes = [12, 8], strides = [1, 1]} : vector<12x32xf32> to vector<12x8xf32>
    %336 = arith.truncf %335 : vector<12x8xf32> to vector<12x8xbf16>
    %cst_113 = arith.constant dense<0.000000e+00> : vector<12x12xf32>
    %337 = tpu.matmul %332, %334, %cst_113 {dimension_numbers = #tpu.dot_dimension_numbers<[1], [1], [0], [0], [0, 0, 1, 0], [], []>} : vector<12x8xbf16>, vector<12x8xbf16>, vector<12x12xf32> -> vector<12x12xf32>
    %338 = arith.addf %337, %75 : vector<12x12xf32>
    %cst_114 = arith.constant dense<0xFF800000> : vector<12xf32>
    %339 = vector.multi_reduction <maximumf>, %338, %cst_114 [1] : vector<12x12xf32> to vector<12xf32>
    %340 = vector.shape_cast %339 : vector<12xf32> to vector<12x1xf32>
    %341 = vector.broadcast %340 : vector<12x1xf32> to vector<12x12xf32>
    %342 = arith.subf %338, %341 : vector<12x12xf32>
    %343 = math.exp %342 : vector<12x12xf32>
    %cst_115 = arith.constant dense<0.000000e+00> : vector<12xf32>
    %344 = vector.multi_reduction <add>, %343, %cst_115 [1] : vector<12x12xf32> to vector<12xf32>
    %345 = vector.shape_cast %344 : vector<12xf32> to vector<12x1xf32>
    %346 = tpu.reciprocal %345 {approx = true} : vector<12x1xf32> -> vector<12x1xf32>
    %347 = vector.broadcast %346 : vector<12x1xf32> to vector<12x12xf32>
    %348 = arith.mulf %343, %347 : vector<12x12xf32>
    %349 = arith.truncf %348 : vector<12x12xf32> to vector<12x12xbf16>
    %cst_116 = arith.constant dense<0.000000e+00> : vector<12x8xf32>
    %350 = tpu.matmul %349, %336, %cst_116 {dimension_numbers = #tpu.dot_dimension_numbers<[1], [0], [0], [1], [0, 0, 1, 1], [], []>} : vector<12x12xbf16>, vector<12x8xbf16>, vector<12x8xf32> -> vector<12x8xf32>
    %c0_117 = arith.constant 0 : index
    %c24_118 = arith.constant 24 : index
    %351 = vector.load %arg11[%c0_117, %c24_118] : memref<12x32xf32, #tpu.memory_space<vmem>>, vector<12x8xf32>
    tpu.vector_store %arg11[%c0_117, %c24_118], %350 {strides = array<i32>} : memref<12x32xf32, #tpu.memory_space<vmem>>, vector<12x8xf32>,
    %c0_119 = arith.constant 0 : index
    %c0_120 = arith.constant 0 : index
    %352 = vector.load %arg11[%c0_119, %c0_120] : memref<12x32xf32, #tpu.memory_space<vmem>>, vector<12x32xf32>
    %353 = arith.truncf %352 : vector<12x32xf32> to vector<12x32xbf16>
    %c1_121 = arith.constant 1 : index
    %c0_122 = arith.constant 0 : index
    %c0_123 = arith.constant 0 : index
    %354 = vector.load %arg5[%c1_121, %c0_122, %c0_123] : memref<2x32x32xbf16, #tpu.memory_space<vmem>>, vector<1x32x32xbf16>
    %355 = vector.shape_cast %354 : vector<1x32x32xbf16> to vector<32x32xbf16>
    %cst_124 = arith.constant dense<0.000000e+00> : vector<12x32xf32>
    %356 = tpu.matmul %353, %355, %cst_124 {dimension_numbers = #tpu.dot_dimension_numbers<[1], [0], [0], [1], [0, 0, 1, 1], [], []>} : vector<12x32xbf16>, vector<32x32xbf16>, vector<12x32xf32> -> vector<12x32xf32>
    %357 = vector.broadcast %252 : vector<1x32xf32> to vector<12x32xf32>
    %358 = arith.addf %356, %357 : vector<12x32xf32>
    %359 = arith.addf %245, %358 : vector<12x32xf32>
    %cst_125 = arith.constant dense<0.000000e+00> : vector<12xf32>
    %360 = vector.multi_reduction <add>, %359, %cst_125 [1] : vector<12x32xf32> to vector<12xf32>
    %361 = vector.shape_cast %360 : vector<12xf32> to vector<12x1xf32>
    %cst_126 = arith.constant 3.200000e+01 : f32
    %362 = vector.broadcast %cst_126 : f32 to vector<12x1xf32>
    %363 = arith.divf %361, %362 : vector<12x1xf32>
    %364 = vector.broadcast %363 : vector<12x1xf32> to vector<12x32xf32>
    %365 = arith.subf %359, %364 : vector<12x32xf32>
    %366 = arith.mulf %365, %365 : vector<12x32xf32>
    %cst_127 = arith.constant dense<0.000000e+00> : vector<12xf32>
    %367 = vector.multi_reduction <add>, %366, %cst_127 [1] : vector<12x32xf32> to vector<12xf32>
    %368 = vector.shape_cast %367 : vector<12xf32> to vector<12x1xf32>
    %cst_128 = arith.constant 3.200000e+01 : f32
    %369 = vector.broadcast %cst_128 : f32 to vector<12x1xf32>
    %370 = arith.divf %368, %369 : vector<12x1xf32>
    %371 = vector.broadcast %363 : vector<12x1xf32> to vector<12x32xf32>
    %372 = arith.subf %359, %371 : vector<12x32xf32>
    %cst_129 = arith.constant 9.99999974E-6 : f32
    %373 = vector.broadcast %cst_129 : f32 to vector<12x1xf32>
    %374 = arith.addf %370, %373 : vector<12x1xf32>
    %375 = math.rsqrt %374 : vector<12x1xf32>
    %376 = vector.broadcast %375 : vector<12x1xf32> to vector<12x32xf32>
    %377 = arith.mulf %372, %376 : vector<12x32xf32>
    %378 = vector.broadcast %253 : vector<1x32xf32> to vector<12x32xf32>
    %379 = arith.mulf %377, %378 : vector<12x32xf32>
    %380 = vector.broadcast %254 : vector<1x32xf32> to vector<12x32xf32>
    %381 = arith.addf %379, %380 : vector<12x32xf32>
    %382 = arith.truncf %381 : vector<12x32xf32> to vector<12x32xbf16>
    %c1_130 = arith.constant 1 : index
    %c0_131 = arith.constant 0 : index
    %c0_132 = arith.constant 0 : index
    %383 = vector.load %arg6[%c1_130, %c0_131, %c0_132] : memref<2x32x64xbf16, #tpu.memory_space<vmem>>, vector<1x32x64xbf16>
    %384 = vector.shape_cast %383 : vector<1x32x64xbf16> to vector<32x64xbf16>
    %cst_133 = arith.constant dense<0.000000e+00> : vector<12x64xf32>
    %385 = tpu.matmul %382, %384, %cst_133 {dimension_numbers = #tpu.dot_dimension_numbers<[1], [0], [0], [1], [0, 0, 1, 1], [], []>} : vector<12x32xbf16>, vector<32x64xbf16>, vector<12x64xf32> -> vector<12x64xf32>
    %386 = vector.broadcast %255 : vector<1x64xf32> to vector<12x64xf32>
    %387 = arith.addf %385, %386 : vector<12x64xf32>
    %cst_134 = arith.constant 0.000000e+00 : f32
    %388 = vector.broadcast %cst_134 : f32 to vector<12x64xf32>
    %389 = arith.maximumf %387, %388 : vector<12x64xf32>
    %390 = arith.truncf %389 : vector<12x64xf32> to vector<12x64xbf16>
    %c1_135 = arith.constant 1 : index
    %c0_136 = arith.constant 0 : index
    %c0_137 = arith.constant 0 : index
    %391 = vector.load %arg7[%c1_135, %c0_136, %c0_137] : memref<2x64x32xbf16, #tpu.memory_space<vmem>>, vector<1x64x32xbf16>
    %392 = vector.shape_cast %391 : vector<1x64x32xbf16> to vector<64x32xbf16>
    %cst_138 = arith.constant dense<0.000000e+00> : vector<12x32xf32>
    %393 = tpu.matmul %390, %392, %cst_138 {dimension_numbers = #tpu.dot_dimension_numbers<[1], [0], [0], [1], [0, 0, 1, 1], [], []>} : vector<12x64xbf16>, vector<64x32xbf16>, vector<12x32xf32> -> vector<12x32xf32>
    %394 = vector.broadcast %256 : vector<1x32xf32> to vector<12x32xf32>
    %395 = arith.addf %393, %394 : vector<12x32xf32>
    %396 = arith.addf %381, %395 : vector<12x32xf32>
    %cst_139 = arith.constant dense<0.000000e+00> : vector<12xf32>
    %397 = vector.multi_reduction <add>, %396, %cst_139 [1] : vector<12x32xf32> to vector<12xf32>
    %398 = vector.shape_cast %397 : vector<12xf32> to vector<12x1xf32>
    %cst_140 = arith.constant 3.200000e+01 : f32
    %399 = vector.broadcast %cst_140 : f32 to vector<12x1xf32>
    %400 = arith.divf %398, %399 : vector<12x1xf32>
    %401 = vector.broadcast %400 : vector<12x1xf32> to vector<12x32xf32>
    %402 = arith.subf %396, %401 : vector<12x32xf32>
    %403 = arith.mulf %402, %402 : vector<12x32xf32>
    %cst_141 = arith.constant dense<0.000000e+00> : vector<12xf32>
    %404 = vector.multi_reduction <add>, %403, %cst_141 [1] : vector<12x32xf32> to vector<12xf32>
    %405 = vector.shape_cast %404 : vector<12xf32> to vector<12x1xf32>
    %cst_142 = arith.constant 3.200000e+01 : f32
    %406 = vector.broadcast %cst_142 : f32 to vector<12x1xf32>
    %407 = arith.divf %405, %406 : vector<12x1xf32>
    %408 = vector.broadcast %400 : vector<12x1xf32> to vector<12x32xf32>
    %409 = arith.subf %396, %408 : vector<12x32xf32>
    %cst_143 = arith.constant 9.99999974E-6 : f32
    %410 = vector.broadcast %cst_143 : f32 to vector<12x1xf32>
    %411 = arith.addf %407, %410 : vector<12x1xf32>
    %412 = math.rsqrt %411 : vector<12x1xf32>
    %413 = vector.broadcast %412 : vector<12x1xf32> to vector<12x32xf32>
    %414 = arith.mulf %409, %413 : vector<12x32xf32>
    %415 = vector.broadcast %257 : vector<1x32xf32> to vector<12x32xf32>
    %416 = arith.mulf %414, %415 : vector<12x32xf32>
    %417 = vector.broadcast %258 : vector<1x32xf32> to vector<12x32xf32>
    %418 = arith.addf %416, %417 : vector<12x32xf32>
    %c1_144 = arith.constant 1 : index
    %c0_145 = arith.constant 0 : index
    %c0_146 = arith.constant 0 : index
    %419 = vector.load %arg9[%c1_144, %c0_145, %c0_146] : memref<2x12x32xf32, #tpu.memory_space<vmem>>, vector<1x12x32xf32>
    %420 = vector.shape_cast %419 : vector<1x12x32xf32> to vector<12x32xf32>
    %421 = vector.shape_cast %418 : vector<12x32xf32> to vector<1x12x32xf32>
    tpu.vector_store %arg9[%c1_144, %c0_145, %c0_146], %421 {strides = array<i32>} : memref<2x12x32xf32, #tpu.memory_space<vmem>>, vector<1x12x32xf32>,
    return
  }
}

</mosaic_0001>

<bundles_post_ra>
// kernel: memory_augmented_encoder_cbs_forward.1
= control target key start
LH: loop header
LB: loop body
LE: loop exit
PB: predicated region body
PF: predicated region fallthrough
CT: control target
= control target key end

     0   :  { %v2558_v0 = vmov 0.0   ;;  %vm2559_vm0 = vmmov 0   ;;  %vm69_vm1 = vcmask 392192   ;;  %vm114_vm2 = vcmask 261120   ;;  %s2562_s16 = smov 96   ;;  %s2563_s17 = smov 120   ;;  %s3135_s1 = inlined_call_operand.vmem [shape: bf16[48,32], index: 1, kind: input, shape index: {}]   ;;  %s3136_s0 = inlined_call_operand.vmem [shape: f32[12,48], index: 0, kind: input, shape index: {}]   ;;  %s3137_s2 = inlined_call_operand.vmem [shape: f32[3,32], index: 2, kind: input, shape index: {}]   ;;  %s3138_s4 = inlined_call_operand.vmem [shape: bf16[2,32,96], index: 4, kind: input, shape index: {}]   ;;  %s3139_s10 = inlined_call_operand.vmem [shape: f32[12,1], index: 10, kind: output, shape index: {1}]   ;;  %s3140_s8 = inlined_call_operand.vmem [shape: f32[2,8,128], index: 8, kind: input, shape index: {}]   ;;  %s3141_s3 = inlined_call_operand.vmem [shape: f32[12,12], index: 3, kind: input, shape index: {}]   ;;  %s3142_s5 = inlined_call_operand.vmem [shape: bf16[2,32,32], index: 5, kind: input, shape index: {}]   ;;  %s3143_s6 = inlined_call_operand.vmem [shape: bf16[2,32,64], index: 6, kind: input, shape index: {}]   ;;  %s3144_s7 = inlined_call_operand.vmem [shape: bf16[2,64,32], index: 7, kind: input, shape index: {}]   ;;  %s3145_s9 = inlined_call_operand.vmem [shape: f32[2,12,32], index: 9, kind: output, shape index: {0}]  }
   0x1   :  { %2239 = vmatprep.subr.bf16.mxu0 %v2558_v0  ;;  %v2447_v1 = vld [vmem:[%s3135_s1] sm:$0xff]   ;;  %2245 = vmatprep.mubr.msk.bf16.mxu0 %vm2559_vm0, %v2558_v0  ;;  %v2448_v2 = vld [vmem:[%s3135_s1 + $0x8] sm:$0xff]   ;;  %v2449_v3 = vld [vmem:[%s3135_s1 + $0x10] sm:$0xff]   ;;  %vm118_vm3 = vcmask 257024   ;;  %vm197_vm4 = vcmask 7168   ;;  %vm199_vm6 = vcmask 3072  }
   0x2   :  { %2256 = vmatprep.subr.bf16.mxu1 %v2558_v0  ;;  %2260 = vmatprep.mubr.msk.bf16.mxu1 %vm2559_vm0, %v2558_v0  ;;  %v38_v4 = vld [vmem:[%s3136_s0] sm:$0xff]  ;;  %v39_v5 = vld [vmem:[%s3136_s0 + $0x8] sm:$0xf]  ;;  %vm2425_vm8 = vmpackc.low %vm114_vm2, %vm114_vm2  ;;  %s2564_s18 = smov 112   ;;  %s2565_s19 = smov 80   ;;  %vm363_vm9 = vcmask 64512  }
   0x3   :  { %2240 = vmatpush3.bf16.msra.mxu0 %v2447_v1  ;;  %v40_v6 = vpack.c.bf16 %v39_v5, %v38_v4  ;;  %v2093_v7 = vld [vmem:[%s3137_s2] ss:$0 sm:$0xff]  ;;  %v2098_v33 = vld [vmem:[%s3137_s2 + $0x1] ss:$0 sm:$0xff]  ;;  %v2099_v35 = vld [vmem:[%s3137_s2 + $0x2] ss:$0 sm:$0xff] }
   0x4   :  { %2241 = vmatprep.subr.bf16.mxu0 %v2558_v0  ;;  %v2450_v56 = vld [vmem:[%s3138_s4] sm:$0xff]   ;;  %v2451_v57 = vld [vmem:[%s3138_s4 + $0x8] sm:$0xff]   ;;  %s2566_s20 = smov 104   ;;  %s2567_s21 = smov 72   ;;  %vm411_vm12 = vcmask 97280   ;;  %vm415_vm13 = vcmask 93184  }
   0x5   :  { %2257 = vmatpush3.bf16.msra.mxu1 %v2450_v56  ;;  %vm441_vm14 = vcmask 1045504   ;;  %s2569_s1 = smov 48   ;;  %s2570_s25 = smov 40   ;;  %vm487_vm15 = vcmask 60416  }
   0x6   :  { %2258 = vmatprep.subr.bf16.mxu1 %v2558_v0  ;;  %s2571_s26 = smov 56   ;;  %s2572_s2 = smov 8  }
   0x7   :  { %2242 = vmatpush3.bf16.msra.mxu0 %v2448_v2  ;;  %s2573_s29 = smov 16   ;;  %s2574_s12 = smov 24  }
   0x8   :  { %2243 = vmatprep.subr.bf16.mxu0 %v2558_v0 }
   0x9   :  { %2259 = vmatpush3.bf16.msra.mxu1 %v2451_v57 }
   0xa   :  { %2270 = vmatprep.subr.bf16.mxu1 %v2558_v0 }
   0xb   :  { %2244 = vmatpush3.bf16.msra.mxu0 %v2449_v3 }
   0xe   :  { %2246 = vmatmul.mubr.msk.bf16.vlgmr.msra.gmra.mrb[0].mxu0 %vm69_vm1, %v40_v6  ;;  %vm620_vm1 = vcmask 130112  }
  0xe1   :  { %v107_v8 = vpop.f32.mrb[0].mxu0 }
  0xe2   :  { %v108_v9 = vadd.f32 %v2093_v7, %v107_v8  ;;  %v2247_v10 = vpop.f32.mrb[1].mxu0 }
  0xe3   :  { %v110_v11 = vpop.f32.mrb[2].mxu0 }
  0xe4   :  { %v111_v12 = vadd.f32 %v2093_v7, %v110_v11  ;;  %v2248_v13 = vpop.f32.mrb[3].mxu0  ;;  %v115_v14 = vsel %vm114_vm2, %v108_v9, 0.0 }
  0xe5   :  { %116 = vadd.xlane.f32.xlu0 %v115_v14 }
  0xe6   :  { %v119_v15 = vsel %vm118_vm3, %v111_v12, 0.0 }
  0xe9   :  { %120 = vadd.xlane.f32.xlu0 %v119_v15 }
 0x172   :  { %v117_v16 = vpop.xlane.xlu0 %116 }
 0x173   :  { %v123_v17 = vmul.f32 0.03125, %v117_v16 }
 0x175   :  { %v125_v18 = vsub.f32 %v108_v9, %v123_v17 }
 0x176   :  { %v121_v19 = vpop.xlane.xlu0 %120 }
 0x177   :  { %v124_v20 = vmul.f32 0.03125, %v121_v19  ;;  %v127_v21 = vmul.f32 %v125_v18, %v125_v18 }
 0x179   :  { %v126_v22 = vsub.f32 %v111_v12, %v124_v20  ;;  %v129_v23 = vsel %vm114_vm2, %v127_v21, 0.0  ;;  %v2560_v12 = vmov 1.0   ;;  %v2712_v21 = vld [vmem:[%s3140_s8] sm:$0xff] }
 0x17a   :  { %130 = vadd.xlane.f32.xlu1 %v129_v23  ;;  %2253 = vmatprep.mubr.msk.f32.mxu0 %vm114_vm2, %v2560_v12 }
 0x17b   :  { %v128_v24 = vmul.f32 %v126_v22, %v126_v22 }
 0x17d   :  { %v132_v25 = vsel %vm118_vm3, %v128_v24, 0.0 }
 0x17e   :  { %133 = vadd.xlane.f32.xlu1 %v132_v25 }
 0x207   :  { %v131_v26 = vpop.xlane.xlu1 %130 }
 0x208   :  { %v135_v27 = vmul.f32 0.03125, %v131_v26 }
 0x20a   :  { %v137_v28 = vadd.f32 1e-05, %v135_v27 }
 0x20b   :  { %v134_v29 = vpop.xlane.xlu1 %133 }
 0x20c   :  { %2470 = vrsqrt.f32 %v137_v28  ;;  %v136_v30 = vmul.f32 0.03125, %v134_v29 }
 0x20e   :  { %v138_v31 = vadd.f32 1e-05, %v136_v30 }
 0x210   :  { %2472 = vrsqrt.f32 %v138_v31 }
 0x216   :  { %v2471_v32 = vpop.eup %2470 }
 0x217   :  { %v141_v34 = vmul.f32 %v2471_v32, %v125_v18  ;;  %v299_v18 = vlaneseq }
 0x219   :  { %v147_v36 = vmul.f32 %v2098_v33, %v141_v34  ;;  %v2706_v19 = vshrl.u32 %v299_v18, 7 }
 0x21a   :  { %v2473_v37 = vpop.eup %2472 }
 0x21b   :  { %v153_v38 = vadd.f32 %v2099_v35, %v147_v36  ;;  %v142_v39 = vmul.f32 %v2473_v37, %v126_v22  ;;  %v301_v20 = vsub.s32 0, %v2706_v19 }
 0x21d   :  { %v155_v40 = vmax.f32 %v153_v38, 0.0  ;;  %v148_v41 = vmul.f32 %v2098_v33, %v142_v39  ;;  %v302_v22 = vrot.slane %v2712_v21, %v301_v20 }
 0x21f   :  { %v157_v42 = vsel %vm114_vm2, %v155_v40, 0.0  ;;  %v154_v43 = vadd.f32 %v2099_v35, %v148_v41 }
 0x220   :  { %158 = vadd.xlane.f32.xlu0 %v157_v42 }
 0x221   :  { %v156_v44 = vmax.f32 %v154_v43, 0.0  ;;  %v285_v43 = vld [vmem:[%s3141_s3] sm:$0xff] }
 0x223   :  { %v160_v45 = vsel %vm118_vm3, %v156_v44, 0.0 }
 0x224   :  { %161 = vadd.xlane.f32.xlu1 %v160_v45  ;;  %v286_v45 = vld [vmem:[%s3141_s3 + $0x8] sm:$0xf]  ;;  %s2568_s3 = smov 64  }
 0x2ad   :  { %v159_v46 = vpop.xlane.xlu0 %158 }
 0x2ae   :  { %v163_v47 = vmul.f32 0.03125, %v159_v46 }
 0x2b0   :  { %v165_v48 = vsub.f32 %v155_v40, %v163_v47 }
 0x2b1   :  { %v162_v49 = vpop.xlane.xlu1 %161 }
 0x2b2   :  { %v164_v50 = vmul.f32 0.03125, %v162_v49  ;;  %v167_v51 = vmul.f32 %v165_v48, %v165_v48 }
 0x2b4   :  { %v166_v52 = vsub.f32 %v156_v44, %v164_v50  ;;  %v169_v53 = vsel %vm114_vm2, %v167_v51, 0.0 }
 0x2b5   :  { %170 = vadd.xlane.f32.xlu0 %v169_v53 }
 0x2b6   :  { %v168_v54 = vmul.f32 %v166_v52, %v166_v52 }
 0x2b8   :  { %v172_v55 = vsel %vm118_vm3, %v168_v54, 0.0 }
 0x2b9   :  { %173 = vadd.xlane.f32.xlu1 %v172_v55 }
 0x342   :  { %v171_v58 = vpop.xlane.xlu0 %170 }
 0x343   :  { %v175_v59 = vmul.f32 0.03125, %v171_v58 }
 0x345   :  { %v177_v60 = vadd.f32 1e-05, %v175_v59 }
 0x346   :  { %v174_v61 = vpop.xlane.xlu1 %173 }
 0x347   :  { %2474 = vrsqrt.f32 %v177_v60  ;;  %v176_v62 = vmul.f32 0.03125, %v174_v61 }
 0x349   :  { %v178_v63 = vadd.f32 1e-05, %v176_v62 }
 0x34b   :  { %2476 = vrsqrt.f32 %v178_v63 }
 0x351   :  { %v2475_v1 = vpop.eup %2474 }
 0x352   :  { %v181_v2 = vmul.f32 %v2475_v1, %v165_v48 }
 0x354   :  { %v183_v3 = vmul.f32 %v2098_v33, %v181_v2 }
 0x355   :  { %v2477_v4 = vpop.eup %2476 }
 0x356   :  { %v2678_v5 = vadd.f32 %v2099_v35, %v183_v3  ;;  %v182_v6 = vmul.f32 %v2477_v4, %v166_v52 }
 0x358   :  { %v187_v7 = vsel %vm114_vm2, %v2678_v5, 0.0  ;;  %v184_v8 = vmul.f32 %v2098_v33, %v182_v6 }
 0x359   :  { %188 = vadd.xlane.f32.xlu0 %v187_v7 }
 0x35a   :  { %v2682_v9 = vadd.f32 %v2099_v35, %v184_v8 }
 0x35c   :  { %v190_v10 = vsel %vm118_vm3, %v2682_v9, 0.0  ;;  %v294_v11 = vpack.c.bf16 %v2682_v9, %v2678_v5 }
 0x35d   :  { %191 = vadd.xlane.f32.xlu1 %v190_v10 }
 0x35e   :  { %2261 = vmatmul.mubr.msk.bf16.vlgmr.msra.gmra.mrb[0].mxu1 %vm114_vm2, %v294_v11 }
 0x35f   :  { %2272 = vmatprep.mubr.msk.bf16.mxu1 %vm2559_vm0, %v2558_v0 }
 0x3e6   :  { %v189_v13 = vpop.xlane.xlu0 %188 }
 0x3e7   :  { %vm193_vm5 = vcmp.eq.f32.partialorder %v189_v13, 0.0 }
 0x3e8   :  { %v195_v14 = vsel %vm193_vm5, 1.0, %v2558_v0  ;;  %vm755_vm5 = vcmask 195712  }
 0x3e9   :  { %198 = vst.msk [vmem:[%s3139_s10] sm:$0xff] %vm197_vm4, %v195_v14  ;;  %vm622_vm4 = vcmask 126016  }
 0x3ea   :  { %v192_v15 = vpop.xlane.xlu1 %191 }
 0x3eb   :  { %vm194_vm7 = vcmp.eq.f32.partialorder %v192_v15, 0.0 }
 0x3ec   :  { %v196_v16 = vsel %vm194_vm7, 1.0, %v2558_v0  ;;  %vm890_vm7 = vcmask 261312  }
 0x3ed   :  { %200 = vst.msk [vmem:[%s3139_s10 + $0x8] sm:$0xf] %vm199_vm6, %v196_v16  ;;  %v2424_v17 = vpack.c.bf16 %v196_v16, %v195_v14  ;;  %s2561_s10 = smov 88   ;;  %vm757_vm6 = vcmask 191616  }
 0x3ef   :  { %2426 = vmatprep.subr.msk.bf16.mxu0 %vm2425_vm8, %v2424_v17 }
 0x3f0   :  { %2429 = vmatpush3.bf16.xpose.msk.msra.mxu0 %vm2425_vm8, %v2424_v17  ;;  %vm892_vm8 = vcmask 257216  }
 0x3f1   :  { %2264 = vmatprep.subr.bf16.mxu0 %v2558_v0 }
 0x3f7   :  { %2254 = vmatmul.mubr.msk.f32.vlgmr.msra.gmra.mrb[4].mxu0 %vm114_vm2, %v2560_v12 }
 0x3f8   :  { %2266 = vmatprep.mubr.msk.bf16.mxu0 %vm2559_vm0, %v2558_v0 }
 0x431   :  { %v352_v23 = vpop.f32.mrb[0].mxu1 }
 0x432   :  { %v2262_v24 = vpop.f32.mrb[1].mxu1  ;;  %v353_v26 = vadd.f32 %v352_v23, %v302_v22 }
 0x433   :  { %v355_v25 = vpop.f32.mrb[2].mxu1 }
 0x434   :  { %v356_v27 = vadd.f32 %v355_v25, %v302_v22  ;;  %v2263_v28 = vpop.f32.mrb[3].mxu1 }
 0x436   :  { %v2717_v29 = vpack.c.bf16 %v356_v27, %v353_v26 }
 0x438   :  { %491 = vrot.lane.b32.xlu1 %v2717_v29, %s2561_s10  ;;  %361 = vrot.lane.b32.xlu0 %v2717_v29, %s2562_s16 }
 0x43c   :  { %489 = vrot.lane.b32.xlu1 %v2717_v29, %s2563_s17  ;;  %624 = vrot.lane.b32.xlu0 %v2717_v29, %s2564_s18 }
 0x440   :  { %626 = vrot.lane.b32.xlu1 %v2717_v29, %s2565_s19  ;;  %759 = vrot.lane.b32.xlu0 %v2717_v29, %s2566_s20 }
 0x444   :  { %761 = vrot.lane.b32.xlu1 %v2717_v29, %s2567_s21 }
 0x4aa   :  { %v362_v30 = vpop.permute.xlu0 %361  ;;  %v492_v32 = vpop.permute.xlu1 %491 }
 0x4ab   :  { %v368_v31 = vsel %vm363_vm9, %v362_v30, 0  ;;  %v497_v34 = vsel %vm363_vm9, %v492_v32, 0 }
 0x4ac   :  { %2265 = vmatpush3.bf16.xpose.msra.mxu0 %v368_v31 }
 0x4ad   :  { %2276 = vmatprep.subr.bf16.mxu0 %v2558_v0 }
 0x4ae   :  { %v490_v33 = vpop.permute.xlu1 %489  ;;  %v625_v38 = vpop.permute.xlu0 %624 }
 0x4b2   :  { %v627_v35 = vpop.permute.xlu1 %626  ;;  %v760_v40 = vpop.permute.xlu0 %759 }
 0x4b3   :  { %2267 = vmatmul.mubr.msk.bf16.vlgmr.msra.gmra.mrb[8].mxu0 %vm363_vm9, %v2717_v29  ;;  %v632_v36 = vsel %vm363_vm9, %v627_v35, 0 }
 0x4b4   :  { %2277 = vmatpush3.bf16.xpose.msra.mxu0 %v497_v34  ;;  %2278 = vmatprep.mubr.msk.bf16.mxu0 %vm2559_vm0, %v2558_v0 }
 0x4b5   :  { %2288 = vmatprep.subr.bf16.mxu0 %v2558_v0 }
 0x4b6   :  { %v762_v37 = vpop.permute.xlu1 %761 }
 0x4b7   :  { %v767_v39 = vsel %vm363_vm9, %v762_v37, 0 }
 0x4bb   :  { %2279 = vmatmul.mubr.msk.bf16.vlgmr.msra.gmra.mrb[12].mxu0 %vm363_vm9, %v490_v33 }
 0x4bc   :  { %2289 = vmatpush3.bf16.xpose.msra.mxu0 %v632_v36  ;;  %2290 = vmatprep.mubr.msk.bf16.mxu0 %vm2559_vm0, %v2558_v0 }
 0x4bd   :  { %2300 = vmatprep.subr.bf16.mxu0 %v2558_v0 }
 0x4c3   :  { %2291 = vmatmul.mubr.msk.bf16.vlgmr.msra.gmra.mrb[16].mxu0 %vm363_vm9, %v625_v38 }
 0x4c4   :  { %2301 = vmatpush3.bf16.xpose.msra.mxu0 %v767_v39  ;;  %2302 = vmatprep.mubr.msk.bf16.mxu0 %vm2559_vm0, %v2558_v0 }
 0x4c5   :  { %2312 = vmatprep.subr.bf16.mxu0 %v2558_v0 }
 0x4ca   :  { %v2255_v41 = vpop.f32.mrb[4].mxu0 }
 0x4cb   :  { %2303 = vmatmul.mubr.msk.bf16.vlgmr.msra.gmra.mrb[20].mxu0 %vm363_vm9, %v760_v40  ;;  %v276_v42 = vpop.f32.mrb[5].mxu0  ;;  %vm288_vm11 = vcmp.gt.f32.partialorder %v2255_v41, 0.5 }
 0x4cc   :  { %2316 = vmatprep.mubr.msk.bf16.mxu0 %vm2559_vm0, %v2558_v0  ;;  %vm287_vm10 = vcmp.gt.f32.partialorder %v276_v42, 0.5  ;;  %v290_v46 = vsel %vm288_vm11, -1e+30, %v2558_v0 }
 0x4cd   :  { %v289_v44 = vsel %vm287_vm10, -1e+30, %v2558_v0  ;;  %v2764_v49 = vadd.f32 %v290_v46, %v286_v45  ;;  %vm1105_vm10 = vcmask 523264  }
 0x4ce   :  { %v2762_v47 = vadd.f32 %v289_v44, %v285_v43 }
 0x586   :  { %v404_v48 = vpop.f32.mrb[8].mxu0 }
 0x587   :  { %v405_v50 = vadd.f32 %v404_v48, %v2762_v47  ;;  %v2268_v51 = vpop.f32.mrb[9].mxu0 }
 0x588   :  { %v407_v52 = vpop.f32.mrb[10].mxu0 }
 0x589   :  { %v408_v53 = vadd.f32 %v407_v52, %v2764_v49  ;;  %v2269_v54 = vpop.f32.mrb[11].mxu0  ;;  %v412_v55 = vsel %vm411_vm12, %v405_v50, -inf }
 0x58a   :  { %413 = vmax.xlane.f32.xlu1 %v412_v55 }
 0x58b   :  { %v416_v56 = vsel %vm415_vm13, %v408_v53, -inf }
 0x58c   :  { %417 = vmax.xlane.f32.xlu0 %v416_v56 }
 0x58e   :  { %v533_v57 = vpop.f32.mrb[12].mxu0 }
 0x58f   :  { %v534_v58 = vadd.f32 %v533_v57, %v2762_v47  ;;  %v2280_v59 = vpop.f32.mrb[13].mxu0 }
 0x590   :  { %v536_v60 = vpop.f32.mrb[14].mxu0 }
 0x591   :  { %v537_v61 = vadd.f32 %v536_v60, %v2764_v49  ;;  %v2281_v62 = vpop.f32.mrb[15].mxu0  ;;  %v540_v63 = vsel %vm411_vm12, %v534_v58, -inf }
 0x592   :  { %541 = vmax.xlane.f32.xlu0 %v540_v63 }
 0x593   :  { %v543_v1 = vsel %vm415_vm13, %v537_v61, -inf }
 0x596   :  { %v668_v2 = vpop.f32.mrb[16].mxu0  ;;  %544 = vmax.xlane.f32.xlu0 %v543_v1 }
 0x597   :  { %v669_v3 = vadd.f32 %v668_v2, %v2762_v47  ;;  %v2292_v4 = vpop.f32.mrb[17].mxu0 }
 0x598   :  { %v671_v6 = vpop.f32.mrb[18].mxu0 }
 0x599   :  { %v672_v7 = vadd.f32 %v671_v6, %v2764_v49  ;;  %v2293_v8 = vpop.f32.mrb[19].mxu0  ;;  %v675_v10 = vsel %vm411_vm12, %v669_v3, -inf }
 0x59a   :  { %676 = vmax.xlane.f32.xlu1 %v675_v10 }
 0x59b   :  { %v678_v11 = vsel %vm415_vm13, %v672_v7, -inf }
 0x59c   :  { %679 = vmax.xlane.f32.xlu0 %v678_v11 }
 0x59e   :  { %v803_v12 = vpop.f32.mrb[20].mxu0 }
 0x59f   :  { %v804_v13 = vadd.f32 %v803_v12, %v2762_v47  ;;  %v2304_v14 = vpop.f32.mrb[21].mxu0 }
 0x5a0   :  { %v806_v15 = vpop.f32.mrb[22].mxu0 }
 0x5a1   :  { %v807_v16 = vadd.f32 %v806_v15, %v2764_v49  ;;  %v2305_v17 = vpop.f32.mrb[23].mxu0  ;;  %v810_v18 = vsel %vm411_vm12, %v804_v13, -inf }
 0x5a2   :  { %811 = vmax.xlane.f32.xlu1 %v810_v18 }
 0x5a3   :  { %v813_v22 = vsel %vm415_vm13, %v807_v16, -inf }
 0x5a4   :  { %814 = vmax.xlane.f32.xlu0 %v813_v22 }
 0x5b3   :  { %436 = vrot.lane.b32.xlu1 %v2717_v29, %s2568_s3 }
 0x617   :  { %v414_v23 = vpop.xlane.xlu1 %413 }
 0x618   :  { %v419_v24 = vsub.f32 %v405_v50, %v414_v23 }
 0x619   :  { %v418_v25 = vpop.xlane.xlu0 %417 }
 0x61a   :  { %v421_v26 = vmul.f32 1.442695, %v419_v24  ;;  %v420_v27 = vsub.f32 %v408_v53, %v418_v25 }
 0x61c   :  { %2478 = vpow2.f32 %v421_v26  ;;  %v423_v28 = vmul.f32 1.442695, %v420_v27 }
 0x61e   :  { %2480 = vpow2.f32 %v423_v28 }
 0x61f   :  { %v542_v30 = vpop.xlane.xlu0 %541 }
 0x620   :  { %v546_v31 = vsub.f32 %v534_v58, %v542_v30 }
 0x622   :  { %v548_v32 = vmul.f32 1.442695, %v546_v31 }
 0x623   :  { %v545_v33 = vpop.xlane.xlu0 %544 }
 0x624   :  { %2482 = vpow2.f32 %v548_v32  ;;  %v547_v34 = vsub.f32 %v537_v61, %v545_v33 }
 0x626   :  { %v2479_v35 = vpop.eup %2478  ;;  %v550_v36 = vmul.f32 1.442695, %v547_v34 }
 0x627   :  { %v677_v37 = vpop.xlane.xlu1 %676  ;;  %v425_v38 = vsel %vm411_vm12, %v2479_v35, 0.0 }
 0x628   :  { %v2481_v39 = vpop.eup %2480  ;;  %2484 = vpow2.f32 %v550_v36  ;;  %v681_v40 = vsub.f32 %v669_v3, %v677_v37  ;;  %426 = vadd.xlane.f32.xlu1 %v425_v38 }
 0x629   :  { %v680_v41 = vpop.xlane.xlu0 %679  ;;  %v428_v42 = vsel %vm415_vm13, %v2481_v39, 0.0 }
 0x62a   :  { %v683_v43 = vmul.f32 1.442695, %v681_v40  ;;  %v682_v44 = vsub.f32 %v672_v7, %v680_v41  ;;  %429 = vadd.xlane.f32.xlu0 %v428_v42 }
 0x62c   :  { %2486 = vpow2.f32 %v683_v43  ;;  %v685_v45 = vmul.f32 1.442695, %v682_v44 }
 0x62e   :  { %v2786_v46 = vpop.eup %2482  ;;  %2488 = vpow2.f32 %v685_v45 }
 0x62f   :  { %v812_v48 = vpop.xlane.xlu1 %811  ;;  %v552_v50 = vsel %vm411_vm12, %v2786_v46, 0.0 }
 0x630   :  { %v816_v51 = vsub.f32 %v804_v13, %v812_v48  ;;  %553 = vadd.xlane.f32.xlu1 %v552_v50 }
 0x631   :  { %v815_v52 = vpop.xlane.xlu0 %814 }
 0x632   :  { %v2485_v53 = vpop.eup %2484  ;;  %v818_v54 = vmul.f32 1.442695, %v816_v51  ;;  %v817_v55 = vsub.f32 %v807_v16, %v815_v52 }
 0x633   :  { %v437_v56 = vpop.permute.xlu1 %436  ;;  %v555_v57 = vsel %vm415_vm13, %v2485_v53, 0.0 }
 0x634   :  { %2490 = vpow2.f32 %v818_v54  ;;  %v820_v58 = vmul.f32 1.442695, %v817_v55  ;;  %v443_v59 = vsel %vm441_vm14, %v437_v56, 0  ;;  %556 = vadd.xlane.f32.xlu0 %v555_v57  ;;  %v2452_v54 = vld [vmem:[%s3142_s5] sm:$0xff]   ;;  %v2453_v57 = vld [vmem:[%s3142_s5 + $0x8] sm:$0xff]  }
 0x635   :  { %2271 = vmatpush3.bf16.msra.mxu1 %v443_v59  ;;  %2313 = vmatpush3.bf16.msra.mxu0 %v2452_v54 }
 0x636   :  { %v2487_v60 = vpop.eup %2486  ;;  %2492 = vpow2.f32 %v820_v58  ;;  %2282 = vmatprep.subr.bf16.mxu1 %v2558_v0  ;;  %2314 = vmatprep.subr.bf16.mxu0 %v2558_v0 }
 0x637   :  { %v687_v61 = vsel %vm411_vm12, %v2487_v60, 0.0 }
 0x638   :  { %v2489_v62 = vpop.eup %2488  ;;  %688 = vadd.xlane.f32.xlu1 %v687_v61 }
 0x639   :  { %v690_v63 = vsel %vm415_vm13, %v2489_v62, 0.0  ;;  %2315 = vmatpush3.bf16.msra.mxu0 %v2453_v57 }
 0x63a   :  { %691 = vadd.xlane.f32.xlu0 %v690_v63  ;;  %2328 = vmatprep.subr.bf16.mxu0 %v2558_v0 }
 0x63e   :  { %v2795_v1 = vpop.eup %2490 }
 0x63f   :  { %v822_v2 = vsel %vm411_vm12, %v2795_v1, 0.0 }
 0x640   :  { %v2493_v3 = vpop.eup %2492  ;;  %823 = vadd.xlane.f32.xlu1 %v822_v2 }
 0x641   :  { %v825_v4 = vsel %vm415_vm13, %v2493_v3, 0.0 }
 0x642   :  { %826 = vadd.xlane.f32.xlu0 %v825_v4 }
 0x651   :  { %698 = vrot.lane.b32.xlu1 %v2717_v29, %s2569_s1 }
 0x655   :  { %833 = vrot.lane.b32.xlu1 %v2717_v29, %s2570_s25 }
 0x658   :  { %563 = vrot.lane.b32.xlu0 %v2717_v29, %s2571_s26 }
 0x6b5   :  { %v427_v6 = vpop.xlane.xlu1 %426 }
 0x6b6   :  { %2494 = vrcp.f32 %v427_v6 }
 0x6b7   :  { %v430_v7 = vpop.xlane.xlu0 %429 }
 0x6b8   :  { %2496 = vrcp.f32 %v430_v7 }
 0x6bd   :  { %v554_v14 = vpop.xlane.xlu1 %553 }
 0x6c0   :  { %v2495_v8 = vpop.eup %2494 }
 0x6c1   :  { %v557_v11 = vpop.xlane.xlu0 %556  ;;  %v433_v12 = vmul.f32 %v2495_v8, %v2479_v35 }
 0x6c2   :  { %v2497_v10 = vpop.eup %2496  ;;  %2498 = vrcp.f32 %v557_v11 }
 0x6c3   :  { %v434_v13 = vmul.f32 %v2497_v10, %v2481_v39  ;;  %2500 = vrcp.f32 %v554_v14 }
 0x6c5   :  { %v435_v15 = vpack.c.bf16 %v434_v13, %v433_v12  ;;  %v689_v29 = vpop.xlane.xlu1 %688  ;;  %v903_v12 = vsub.s32 1, %v2706_v19 }
 0x6c7   :  { %2273 = vmatmul.mubr.msk.bf16.vlgmr.msra.gmra.mrb[4].mxu1 %vm411_vm12, %v435_v15  ;;  %v692_v16 = vpop.xlane.xlu0 %691  ;;  %v904_v13 = vrot.slane %v2712_v21, %v903_v12 }
 0x6c8   :  { %2284 = vmatprep.mubr.msk.bf16.mxu1 %vm2559_vm0, %v2558_v0  ;;  %2502 = vrcp.f32 %v692_v16 }
 0x6c9   :  { %2504 = vrcp.f32 %v689_v29 }
 0x6cc   :  { %v2499_v17 = vpop.eup %2498 }
 0x6cd   :  { %v824_v18 = vpop.xlane.xlu1 %823  ;;  %v2501_v23 = vpop.eup %2500  ;;  %v561_v24 = vmul.f32 %v2499_v17, %v2485_v53 }
 0x6ce   :  { %v560_v26 = vmul.f32 %v2501_v23, %v2786_v46 }
 0x6cf   :  { %v827_v22 = vpop.xlane.xlu0 %826 }
 0x6d0   :  { %2506 = vrcp.f32 %v827_v22  ;;  %v562_v30 = vpack.c.bf16 %v561_v24, %v560_v26 }
 0x6d1   :  { %v699_v28 = vpop.permute.xlu1 %698  ;;  %2508 = vrcp.f32 %v824_v18 }
 0x6d2   :  { %v2503_v31 = vpop.eup %2502  ;;  %v704_v32 = vsel %vm441_vm14, %v699_v28, 0 }
 0x6d3   :  { %v564_v25 = vpop.permute.xlu0 %563  ;;  %v2505_v33 = vpop.eup %2504  ;;  %v696_v34 = vmul.f32 %v2503_v31, %v2489_v62 }
 0x6d4   :  { %v569_v27 = vsel %vm441_vm14, %v564_v25, 0  ;;  %v695_v35 = vmul.f32 %v2505_v33, %v2487_v60 }
 0x6d5   :  { %2283 = vmatpush3.bf16.msra.mxu1 %v569_v27  ;;  %v834_v36 = vpop.permute.xlu1 %833 }
 0x6d6   :  { %2294 = vmatprep.subr.bf16.mxu1 %v2558_v0  ;;  %v697_v37 = vpack.c.bf16 %v696_v34, %v695_v35  ;;  %v839_v39 = vsel %vm441_vm14, %v834_v36, 0  ;;  %v2455_v36 = vld [vmem:[%s3143_s6 + $0x8] sm:$0xff]  }
 0x6d8   :  { %2285 = vmatmul.mubr.msk.bf16.vlgmr.msra.gmra.mrb[8].mxu1 %vm411_vm12, %v562_v30 }
 0x6d9   :  { %2295 = vmatpush3.bf16.msra.mxu1 %v704_v32  ;;  %2296 = vmatprep.mubr.msk.bf16.mxu1 %vm2559_vm0, %v2558_v0 }
 0x6da   :  { %2306 = vmatprep.subr.bf16.mxu1 %v2558_v0  ;;  %v2507_v38 = vpop.eup %2506 }
 0x6db   :  { %v2509_v40 = vpop.eup %2508  ;;  %v831_v41 = vmul.f32 %v2507_v38, %v2493_v3  ;;  %v2457_v38 = vld [vmem:[%s3144_s7 + $0x8] sm:$0xff]  }
 0x6dc   :  { %v830_v42 = vmul.f32 %v2509_v40, %v2795_v1 }
 0x6de   :  { %v832_v43 = vpack.c.bf16 %v831_v41, %v830_v42 }
 0x6e0   :  { %2297 = vmatmul.mubr.msk.bf16.vlgmr.msra.gmra.mrb[12].mxu1 %vm411_vm12, %v697_v37  ;;  %v2456_v37 = vld [vmem:[%s3144_s7] sm:$0xff]  }
 0x6e1   :  { %2307 = vmatpush3.bf16.msra.mxu1 %v839_v39  ;;  %2308 = vmatprep.mubr.msk.bf16.mxu1 %vm2559_vm0, %v2558_v0 }
 0x6e2   :  { %2320 = vmatprep.subr.bf16.mxu1 %v2558_v0 }
 0x6e8   :  { %2309 = vmatmul.mubr.msk.bf16.vlgmr.msra.gmra.mrb[16].mxu1 %vm411_vm12, %v832_v43 }
 0x6e9   :  { %2324 = vmatprep.mubr.msk.bf16.mxu1 %vm2559_vm0, %v2558_v0 }
 0x79a   :  { %v479_v44 = vpop.f32.mrb[4].mxu1 }
 0x79b   :  { %486 = vst.msk [vmem:[#allocation2] sm:$0xff] %vm363_vm9, %v479_v44  ;;  %v2274_v45 = vpop.f32.mrb[5].mxu1 }
 0x79c   :  { %v482_v46 = vpop.f32.mrb[6].mxu1  ;;  %v991_v45 = vsub.s32 2, %v2706_v19 }
 0x79d   :  { %488 = vst.msk [vmem:[#allocation2 + $0x8] sm:$0xf] %vm487_vm15, %v482_v46  ;;  %v2275_v48 = vpop.f32.mrb[7].mxu1 }
 0x79e   :  { %v992_v48 = vrot.slane %v2712_v21, %v991_v45 }
 0x7ab   :  { %v605_v50 = vpop.f32.mrb[8].mxu1 }
 0x7ac   :  { %614 = vrot.lane.b32.xlu1 %v605_v50, %s2572_s2  ;;  %v2286_v51 = vpop.f32.mrb[9].mxu1 }
 0x7ad   :  { %v608_v52 = vpop.f32.mrb[10].mxu1  ;;  %v997_v51 = vsub.s32 3, %v2706_v19 }
 0x7ae   :  { %616 = vrot.lane.b32.xlu0 %v608_v52, %s2572_s2  ;;  %v2287_v53 = vpop.f32.mrb[11].mxu1 }
 0x7b3   :  { %v740_v55 = vpop.f32.mrb[12].mxu1 }
 0x7b4   :  { %749 = vrot.lane.b32.xlu1 %v740_v55, %s2573_s29  ;;  %v2298_v56 = vpop.f32.mrb[13].mxu1  ;;  %v998_v55 = vrot.slane %v2712_v21, %v997_v51 }
 0x7b5   :  { %v743_v58 = vpop.f32.mrb[14].mxu1 }
 0x7b6   :  { %751 = vrot.lane.b32.xlu0 %v743_v58, %s2573_s29  ;;  %v2299_v59 = vpop.f32.mrb[15].mxu1 }
 0x7bb   :  { %v875_v60 = vpop.f32.mrb[16].mxu1 }
 0x7bc   :  { %884 = vrot.lane.b32.xlu1 %v875_v60, %s2574_s12  ;;  %v2310_v61 = vpop.f32.mrb[17].mxu1  ;;  %v2458_v60 = vld [vmem:[%s3144_s7 + $0x10] sm:$0xff]  }
 0x7bd   :  { %v878_v62 = vpop.f32.mrb[18].mxu1  ;;  %v2459_v61 = vld [vmem:[%s3144_s7 + $0x18] sm:$0xff]  }
 0x7be   :  { %886 = vrot.lane.b32.xlu0 %v878_v62, %s2574_s12  ;;  %v2311_v63 = vpop.f32.mrb[19].mxu1  ;;  %v1008_v62 = vsub.s32 4, %v2706_v19 }
 0x7c0   :  { %v1009_v63 = vrot.slane %v2712_v21, %v1008_v62 }
 0x81e   :  { %v615_v1 = vpop.permute.xlu1 %614 }
 0x81f   :  { %621 = vst.msk [vmem:[#allocation2] sm:$0xff] %vm620_vm1, %v615_v1 }
 0x820   :  { %v617_v2 = vpop.permute.xlu0 %616 }
 0x821   :  { %623 = vst.msk [vmem:[#allocation2 + $0x8] sm:$0xf] %vm622_vm4, %v617_v2 }
 0x826   :  { %v750_v3 = vpop.permute.xlu1 %749 }
 0x827   :  { %756 = vst.msk [vmem:[#allocation2] sm:$0xff] %vm755_vm5, %v750_v3 }
 0x828   :  { %v752_v4 = vpop.permute.xlu0 %751 }
 0x829   :  { %758 = vst.msk [vmem:[#allocation2 + $0x8] sm:$0xf] %vm757_vm6, %v752_v4 }
 0x82e   :  { %v885_v6 = vpop.permute.xlu1 %884 }
 0x82f   :  { %891 = vst.msk [vmem:[#allocation2] sm:$0xff] %vm890_vm7, %v885_v6 }
 0x830   :  { %v887_v7 = vpop.permute.xlu0 %886 }
 0x831   :  { %893 = vst.msk [vmem:[#allocation2 + $0x8] sm:$0xf] %vm892_vm8, %v887_v7 }
 0x836   :  { %v894_v8 = vld [vmem:[#allocation2] sm:$0xff] }
 0x838   :  { %v895_v10 = vld [vmem:[#allocation2 + $0x8] sm:$0xf] }
 0x839   :  { %v896_v11 = vpack.c.bf16 %v895_v10, %v894_v8 }
 0x83b   :  { %2317 = vmatmul.mubr.msk.bf16.vlgmr.msra.gmra.mrb[24].mxu0 %vm114_vm2, %v896_v11 }
 0x83c   :  { %2336 = vmatprep.mubr.msk.bf16.mxu0 %vm2559_vm0, %v2558_v0  ;;  %2329 = vmatpush3.bf16.msra.mxu0 %v2456_v37  ;;  %v2461_v37 = vld [vmem:[%s3138_s4 + $0x18] sm:$0xff]  }
 0x83d   :  { %2330 = vmatprep.subr.bf16.mxu0 %v2558_v0 }
 0x840   :  { %2331 = vmatpush3.bf16.msra.mxu0 %v2457_v38 }
 0x841   :  { %2332 = vmatprep.subr.bf16.mxu0 %v2558_v0 }
 0x844   :  { %2333 = vmatpush3.bf16.msra.mxu0 %v2458_v60  ;;  %v2949_v60 = vld [vmem:[%s3140_s8 + $0x8] sm:$0xff] }
 0x845   :  { %2334 = vmatprep.subr.bf16.mxu0 %v2558_v0 }
 0x848   :  { %2335 = vmatpush3.bf16.msra.mxu0 %v2459_v61  ;;  %v1203_v61 = vrot.slane %v2949_v60, %v301_v20 }
 0x849   :  { %2354 = vmatprep.subr.bf16.mxu0 %v2558_v0 }
 0x90e   :  { %v954_v14 = vpop.f32.mrb[24].mxu0 }
 0x90f   :  { %v955_v15 = vadd.f32 %v954_v14, %v904_v13  ;;  %v2318_v16 = vpop.f32.mrb[25].mxu0 }
 0x910   :  { %v957_v29 = vpop.f32.mrb[26].mxu0 }
 0x911   :  { %v958_v17 = vadd.f32 %v957_v29, %v904_v13  ;;  %v2319_v18 = vpop.f32.mrb[27].mxu0  ;;  %v961_v22 = vadd.f32 %v955_v15, %v2678_v5  ;;  %v1079_v13 = vsub.s32 5, %v2706_v19 }
 0x913   :  { %v963_v23 = vsel %vm114_vm2, %v961_v22, 0.0  ;;  %v962_v24 = vadd.f32 %v958_v17, %v2682_v9  ;;  %v2454_v9 = vld [vmem:[%s3143_s6] sm:$0xff]   ;;  %v1080_v14 = vrot.slane %v2712_v21, %v1079_v13 }
 0x914   :  { %964 = vadd.xlane.f32.xlu1 %v963_v23  ;;  %2321 = vmatpush3.bf16.msra.mxu1 %v2454_v9 }
 0x915   :  { %v966_v25 = vsel %vm118_vm3, %v962_v24, 0.0  ;;  %2322 = vmatprep.subr.bf16.mxu1 %v2558_v0 }
 0x916   :  { %967 = vadd.xlane.f32.xlu0 %v966_v25 }
 0x918   :  { %2323 = vmatpush3.bf16.msra.mxu1 %v2455_v36  ;;  %v2460_v36 = vld [vmem:[%s3138_s4 + $0x10] sm:$0xff]  }
 0x919   :  { %2340 = vmatprep.subr.bf16.mxu1 %v2558_v0 }
 0x9a1   :  { %v965_v26 = vpop.xlane.xlu1 %964 }
 0x9a2   :  { %v969_v27 = vmul.f32 0.03125, %v965_v26 }
 0x9a3   :  { %v968_v28 = vpop.xlane.xlu0 %967 }
 0x9a4   :  { %v971_v30 = vsub.f32 %v961_v22, %v969_v27  ;;  %v970_v31 = vmul.f32 0.03125, %v968_v28 }
 0x9a6   :  { %v972_v32 = vsub.f32 %v962_v24, %v970_v31  ;;  %v973_v33 = vmul.f32 %v971_v30, %v971_v30 }
 0x9a8   :  { %v975_v34 = vsel %vm114_vm2, %v973_v33, 0.0  ;;  %v974_v35 = vmul.f32 %v972_v32, %v972_v32 }
 0x9a9   :  { %976 = vadd.xlane.f32.xlu0 %v975_v34 }
 0x9aa   :  { %v978_v5 = vsel %vm118_vm3, %v974_v35, 0.0 }
 0x9ad   :  { %979 = vadd.xlane.f32.xlu0 %v978_v5 }
 0xa36   :  { %v977_v39 = vpop.xlane.xlu0 %976 }
 0xa37   :  { %v981_v40 = vmul.f32 0.03125, %v977_v39 }
 0xa39   :  { %v983_v41 = vadd.f32 1e-05, %v981_v40 }
 0xa3a   :  { %v980_v42 = vpop.xlane.xlu0 %979 }
 0xa3b   :  { %2510 = vrsqrt.f32 %v983_v41  ;;  %v982_v43 = vmul.f32 0.03125, %v980_v42 }
 0xa3d   :  { %v984_v44 = vadd.f32 1e-05, %v982_v43 }
 0xa3f   :  { %2512 = vrsqrt.f32 %v984_v44  ;;  %v1180_v44 = vsub.s32 6, %v2706_v19 }
 0xa45   :  { %v2511_v46 = vpop.eup %2510 }
 0xa46   :  { %v987_v50 = vmul.f32 %v2511_v46, %v971_v30  ;;  %v1186_v46 = vsub.s32 7, %v2706_v19 }
 0xa48   :  { %v993_v53 = vmul.f32 %v992_v48, %v987_v50 }
 0xa49   :  { %v2513_v52 = vpop.eup %2512 }
 0xa4a   :  { %v988_v54 = vmul.f32 %v2513_v52, %v972_v32  ;;  %v999_v57 = vadd.f32 %v998_v55, %v993_v53  ;;  %v1187_v53 = vrot.slane %v2712_v21, %v1186_v46 }
 0xa4c   :  { %v994_v56 = vmul.f32 %v992_v48, %v988_v54  ;;  %v1181_v48 = vrot.slane %v2712_v21, %v1180_v44 }
 0xa4e   :  { %v1000_v58 = vadd.f32 %v998_v55, %v994_v56 }
 0xa50   :  { %v1001_v59 = vpack.c.bf16 %v1000_v58, %v999_v57 }
 0xa52   :  { %2325 = vmatmul.mubr.msk.bf16.vlgmr.msra.gmra.mrb[20].mxu1 %vm114_vm2, %v1001_v59 }
 0xa53   :  { %2344 = vmatprep.mubr.msk.bf16.mxu1 %vm2559_vm0, %v2558_v0  ;;  %2341 = vmatpush3.bf16.msra.mxu1 %v2460_v36 }
 0xa54   :  { %2342 = vmatprep.subr.bf16.mxu1 %v2558_v0 }
 0xa57   :  { %2343 = vmatpush3.bf16.msra.mxu1 %v2461_v37 }
 0xa58   :  { %2348 = vmatprep.subr.bf16.mxu1 %v2558_v0 }
 0xb25   :  { %v1059_v1 = vpop.f32.mrb[20].mxu1 }
 0xb26   :  { %v1060_v2 = vadd.f32 %v1059_v1, %v1009_v63  ;;  %v2326_v3 = vpop.f32.mrb[21].mxu1 }
 0xb27   :  { %v1062_v4 = vpop.f32.mrb[22].mxu1 }
 0xb28   :  { %v1063_v6 = vadd.f32 %v1062_v4, %v1009_v63  ;;  %v2327_v7 = vpop.f32.mrb[23].mxu1  ;;  %v1066_v8 = vmax.f32 %v1060_v2, 0.0 }
 0xb2a   :  { %v1067_v10 = vmax.f32 %v1063_v6, 0.0 }
 0xb2c   :  { %v1068_v11 = vpack.c.bf16 %v1067_v10, %v1066_v8 }
 0xb2e   :  { %2337 = vmatmul.mubr.msk.bf16.vlgmr.msra.gmra.mrb[28].mxu0 %vm1105_vm10, %v1068_v11 }
 0xb2f   :  { %2356 = vmatprep.mubr.msk.bf16.mxu0 %vm2559_vm0, %v2558_v0 }
 0xc01   :  { %v1143_v15 = vpop.f32.mrb[28].mxu0 }
 0xc02   :  { %v1144_v16 = vadd.f32 %v1143_v15, %v1080_v14  ;;  %v2338_v29 = vpop.f32.mrb[29].mxu0 }
 0xc03   :  { %v1146_v17 = vpop.f32.mrb[30].mxu0 }
 0xc04   :  { %v1147_v18 = vadd.f32 %v1146_v17, %v1080_v14  ;;  %v2339_v22 = vpop.f32.mrb[31].mxu0  ;;  %v1150_v23 = vadd.f32 %v1144_v16, %v999_v57 }
 0xc06   :  { %v1152_v24 = vsel %vm114_vm2, %v1150_v23, 0.0  ;;  %v1151_v25 = vadd.f32 %v1147_v18, %v1000_v58 }
 0xc07   :  { %1153 = vadd.xlane.f32.xlu1 %v1152_v24 }
 0xc08   :  { %v1155_v26 = vsel %vm118_vm3, %v1151_v25, 0.0 }
 0xc09   :  { %1156 = vadd.xlane.f32.xlu0 %v1155_v26 }
 0xc94   :  { %v1154_v27 = vpop.xlane.xlu1 %1153 }
 0xc95   :  { %v1158_v28 = vmul.f32 0.03125, %v1154_v27 }
 0xc96   :  { %v1157_v30 = vpop.xlane.xlu0 %1156 }
 0xc97   :  { %v1160_v31 = vsub.f32 %v1150_v23, %v1158_v28  ;;  %v1159_v32 = vmul.f32 0.03125, %v1157_v30 }
 0xc99   :  { %v1161_v33 = vsub.f32 %v1151_v25, %v1159_v32  ;;  %v1162_v34 = vmul.f32 %v1160_v31, %v1160_v31 }
 0xc9b   :  { %v1164_v35 = vsel %vm114_vm2, %v1162_v34, 0.0  ;;  %v1163_v5 = vmul.f32 %v1161_v33, %v1161_v33 }
 0xc9c   :  { %1165 = vadd.xlane.f32.xlu1 %v1164_v35 }
 0xc9d   :  { %v1167_v9 = vsel %vm118_vm3, %v1163_v5, 0.0 }
 0xc9e   :  { %1168 = vadd.xlane.f32.xlu0 %v1167_v9 }
 0xd29   :  { %v1166_v38 = vpop.xlane.xlu1 %1165 }
 0xd2a   :  { %v1170_v39 = vmul.f32 0.03125, %v1166_v38 }
 0xd2b   :  { %v1169_v40 = vpop.xlane.xlu0 %1168 }
 0xd2c   :  { %v1172_v41 = vadd.f32 1e-05, %v1170_v39  ;;  %v1171_v42 = vmul.f32 0.03125, %v1169_v40 }
 0xd2e   :  { %2514 = vrsqrt.f32 %v1172_v41  ;;  %v1173_v43 = vadd.f32 1e-05, %v1171_v42 }
 0xd30   :  { %2516 = vrsqrt.f32 %v1173_v43 }
 0xd38   :  { %v2515_v50 = vpop.eup %2514 }
 0xd39   :  { %v1176_v52 = vmul.f32 %v2515_v50, %v1160_v31 }
 0xd3a   :  { %v2517_v54 = vpop.eup %2516 }
 0xd3b   :  { %v1182_v55 = vmul.f32 %v1181_v48, %v1176_v52  ;;  %v1177_v56 = vmul.f32 %v2517_v54, %v1161_v33 }
 0xd3d   :  { %v1183_v57 = vmul.f32 %v1181_v48, %v1177_v56  ;;  %v2927_v58 = vadd.f32 %v1187_v53, %v1182_v55 }
 0xd3f   :  { %v2929_v59 = vadd.f32 %v1187_v53, %v1183_v57  ;;  %1190 = vst.msk [vmem:[%s3145_s9] sm:$0xff] %vm114_vm2, %v2927_v58 }
 0xd41   :  { %1191 = vst.msk [vmem:[%s3145_s9 + $0x8] sm:$0xf] %vm118_vm3, %v2929_v59  ;;  %v1194_v21 = vpack.c.bf16 %v2929_v59, %v2927_v58 }
 0xd43   :  { %2345 = vmatmul.mubr.msk.bf16.vlgmr.msra.gmra.mrb[24].mxu1 %vm114_vm2, %v1194_v21 }
 0xd44   :  { %2350 = vmatprep.mubr.msk.bf16.mxu1 %vm2559_vm0, %v2558_v0 }
 0xe16   :  { %v1253_v63 = vpop.f32.mrb[24].mxu1 }
 0xe17   :  { %v2346_v1 = vpop.f32.mrb[25].mxu1  ;;  %v1254_v3 = vadd.f32 %v1253_v63, %v1203_v61 }
 0xe18   :  { %v1256_v2 = vpop.f32.mrb[26].mxu1 }
 0xe19   :  { %v1257_v4 = vadd.f32 %v1256_v2, %v1203_v61  ;;  %v2347_v6 = vpop.f32.mrb[27].mxu1 }
 0xe1b   :  { %v2954_v7 = vpack.c.bf16 %v1257_v4, %v1254_v3 }
 0xe1d   :  { %1387 = vrot.lane.b32.xlu0 %v2954_v7, %s2561_s10  ;;  %1262 = vrot.lane.b32.xlu1 %v2954_v7, %s2562_s16 }
 0xe21   :  { %1653 = vrot.lane.b32.xlu0 %v2954_v7, %s2567_s21  ;;  %1385 = vrot.lane.b32.xlu1 %v2954_v7, %s2563_s17 }
 0xe25   :  { %1520 = vrot.lane.b32.xlu1 %v2954_v7, %s2565_s19 }
 0xe29   :  { %1518 = vrot.lane.b32.xlu1 %v2954_v7, %s2564_s18 }
 0xe2d   :  { %1651 = vrot.lane.b32.xlu1 %v2954_v7, %s2566_s20 }
 0xe8f   :  { %v1263_v20 = vpop.permute.xlu1 %1262  ;;  %v1388_v10 = vpop.permute.xlu0 %1387 }
 0xe90   :  { %v1268_v8 = vsel %vm363_vm9, %v1263_v20, 0  ;;  %v1393_v14 = vsel %vm363_vm9, %v1388_v10, 0 }
 0xe91   :  { %2349 = vmatpush3.bf16.xpose.msra.mxu1 %v1268_v8 }
 0xe92   :  { %2360 = vmatprep.subr.bf16.mxu1 %v2558_v0 }
 0xe93   :  { %v1386_v11 = vpop.permute.xlu1 %1385  ;;  %v1654_v29 = vpop.permute.xlu0 %1653 }
 0xe94   :  { %v1659_v18 = vsel %vm363_vm9, %v1654_v29, 0 }
 0xe97   :  { %v1521_v15 = vpop.permute.xlu1 %1520 }
 0xe98   :  { %2351 = vmatmul.mubr.msk.bf16.vlgmr.msra.gmra.mrb[28].mxu1 %vm363_vm9, %v2954_v7  ;;  %v1526_v16 = vsel %vm363_vm9, %v1521_v15, 0 }
 0xe99   :  { %2361 = vmatpush3.bf16.xpose.msra.mxu1 %v1393_v14  ;;  %2362 = vmatprep.mubr.msk.bf16.mxu1 %vm2559_vm0, %v2558_v0 }
 0xe9a   :  { %2372 = vmatprep.subr.bf16.mxu1 %v2558_v0 }
 0xe9b   :  { %v1519_v17 = vpop.permute.xlu1 %1518 }
 0xe9f   :  { %v1652_v22 = vpop.permute.xlu1 %1651 }
 0xea0   :  { %2363 = vmatmul.mubr.msk.bf16.vlgmr.msra.gmra.mrb[32].mxu1 %vm363_vm9, %v1386_v11 }
 0xea1   :  { %2373 = vmatpush3.bf16.xpose.msra.mxu1 %v1526_v16  ;;  %2374 = vmatprep.mubr.msk.bf16.mxu1 %vm2559_vm0, %v2558_v0 }
 0xea2   :  { %2384 = vmatprep.subr.bf16.mxu1 %v2558_v0 }
 0xea8   :  { %2375 = vmatmul.mubr.msk.bf16.vlgmr.msra.gmra.mrb[36].mxu1 %vm363_vm9, %v1519_v17 }
 0xea9   :  { %2385 = vmatpush3.bf16.xpose.msra.mxu1 %v1659_v18  ;;  %2386 = vmatprep.mubr.msk.bf16.mxu1 %vm2559_vm0, %v2558_v0 }
 0xeaa   :  { %2396 = vmatprep.subr.bf16.mxu1 %v2558_v0 }
 0xeb0   :  { %2387 = vmatmul.mubr.msk.bf16.vlgmr.msra.gmra.mrb[40].mxu1 %vm363_vm9, %v1652_v22 }
 0xeb1   :  { %2400 = vmatprep.mubr.msk.bf16.mxu1 %vm2559_vm0, %v2558_v0 }
 0xf6b   :  { %v1304_v23 = vpop.f32.mrb[28].mxu1 }
 0xf6c   :  { %v1305_v24 = vadd.f32 %v1304_v23, %v2762_v47  ;;  %v2352_v25 = vpop.f32.mrb[29].mxu1 }
 0xf6d   :  { %v1307_v26 = vpop.f32.mrb[30].mxu1 }
 0xf6e   :  { %v1308_v27 = vadd.f32 %v1307_v26, %v2764_v49  ;;  %v2353_v28 = vpop.f32.mrb[31].mxu1  ;;  %v1311_v30 = vsel %vm411_vm12, %v1305_v24, -inf }
 0xf6f   :  { %1312 = vmax.xlane.f32.xlu0 %v1311_v30 }
 0xf70   :  { %v1314_v31 = vsel %vm415_vm13, %v1308_v27, -inf }
 0xf71   :  { %1315 = vmax.xlane.f32.xlu1 %v1314_v31 }
 0xf73   :  { %v1429_v32 = vpop.f32.mrb[32].mxu1 }
 0xf74   :  { %v1430_v33 = vadd.f32 %v1429_v32, %v2762_v47  ;;  %v2364_v34 = vpop.f32.mrb[33].mxu1 }
 0xf75   :  { %v1432_v35 = vpop.f32.mrb[34].mxu1 }
 0xf76   :  { %v1433_v5 = vadd.f32 %v1432_v35, %v2764_v49  ;;  %v2365_v9 = vpop.f32.mrb[35].mxu1  ;;  %v1436_v36 = vsel %vm411_vm12, %v1430_v33, -inf }
 0xf77   :  { %1437 = vmax.xlane.f32.xlu0 %v1436_v36 }
 0xf78   :  { %v1439_v37 = vsel %vm415_vm13, %v1433_v5, -inf }
 0xf7b   :  { %1440 = vmax.xlane.f32.xlu0 %v1439_v37  ;;  %v1562_v38 = vpop.f32.mrb[36].mxu1 }
 0xf7c   :  { %v1563_v39 = vadd.f32 %v1562_v38, %v2762_v47  ;;  %v2376_v40 = vpop.f32.mrb[37].mxu1 }
 0xf7d   :  { %v1565_v41 = vpop.f32.mrb[38].mxu1 }
 0xf7e   :  { %v1566_v42 = vadd.f32 %v1565_v41, %v2764_v49  ;;  %v2377_v43 = vpop.f32.mrb[39].mxu1  ;;  %v1569_v48 = vsel %vm411_vm12, %v1563_v39, -inf }
 0xf7f   :  { %1570 = vmax.xlane.f32.xlu0 %v1569_v48 }
 0xf80   :  { %v1572_v50 = vsel %vm415_vm13, %v1566_v42, -inf }
 0xf81   :  { %1573 = vmax.xlane.f32.xlu1 %v1572_v50 }
 0xf83   :  { %v1695_v52 = vpop.f32.mrb[40].mxu1 }
 0xf84   :  { %v1696_v53 = vadd.f32 %v1695_v52, %v2762_v47  ;;  %v2388_v54 = vpop.f32.mrb[41].mxu1 }
 0xf85   :  { %v1698_v55 = vpop.f32.mrb[42].mxu1 }
 0xf86   :  { %v1699_v56 = vadd.f32 %v1698_v55, %v2764_v49  ;;  %v2389_v57 = vpop.f32.mrb[43].mxu1  ;;  %v1702_v21 = vsel %vm411_vm12, %v1696_v53, -inf }
 0xf87   :  { %1703 = vmax.xlane.f32.xlu0 %v1702_v21 }
 0xf88   :  { %v1705_v61 = vsel %vm415_vm13, %v1699_v56, -inf }
 0xf89   :  { %1706 = vmax.xlane.f32.xlu1 %v1705_v61 }
 0xffc   :  { %v1313_v63 = vpop.xlane.xlu0 %1312 }
 0xffd   :  { %v1317_v1 = vsub.f32 %v1305_v24, %v1313_v63 }
 0xffe   :  { %v1316_v2 = vpop.xlane.xlu1 %1315 }
 0xfff   :  { %v1319_v3 = vmul.f32 1.442695, %v1317_v1  ;;  %v1318_v4 = vsub.f32 %v1308_v27, %v1316_v2 }
0x1001   :  { %2518 = vpow2.f32 %v1319_v3  ;;  %v1321_v6 = vmul.f32 1.442695, %v1318_v4 }
0x1003   :  { %2520 = vpow2.f32 %v1321_v6 }
0x1004   :  { %v1438_v47 = vpop.xlane.xlu0 %1437 }
0x1005   :  { %v1442_v20 = vsub.f32 %v1430_v33, %v1438_v47 }
0x1007   :  { %v1444_v8 = vmul.f32 1.442695, %v1442_v20 }
0x1008   :  { %v1441_v10 = vpop.xlane.xlu0 %1440 }
0x1009   :  { %2522 = vpow2.f32 %v1444_v8  ;;  %v1443_v49 = vsub.f32 %v1433_v5, %v1441_v10 }
0x100b   :  { %v2519_v11 = vpop.eup %2518  ;;  %v1446_v14 = vmul.f32 1.442695, %v1443_v49 }
0x100c   :  { %v1571_v15 = vpop.xlane.xlu0 %1570  ;;  %v1323_v16 = vsel %vm411_vm12, %v2519_v11, 0.0 }
0x100d   :  { %v2521_v29 = vpop.eup %2520  ;;  %2524 = vpow2.f32 %v1446_v14  ;;  %v1575_v17 = vsub.f32 %v1563_v39, %v1571_v15  ;;  %1324 = vadd.xlane.f32.xlu0 %v1323_v16 }
0x100e   :  { %v1574_v18 = vpop.xlane.xlu1 %1573  ;;  %v1326_v22 = vsel %vm415_vm13, %v2521_v29, 0.0 }
0x100f   :  { %v1577_v23 = vmul.f32 1.442695, %v1575_v17  ;;  %v1576_v24 = vsub.f32 %v1566_v42, %v1574_v18  ;;  %1327 = vadd.xlane.f32.xlu1 %v1326_v22 }
0x1011   :  { %2526 = vpow2.f32 %v1577_v23  ;;  %v1579_v25 = vmul.f32 1.442695, %v1576_v24 }
0x1013   :  { %v2523_v26 = vpop.eup %2522  ;;  %2528 = vpow2.f32 %v1579_v25 }
0x1014   :  { %v1704_v27 = vpop.xlane.xlu0 %1703  ;;  %v1448_v28 = vsel %vm411_vm12, %v2523_v26, 0.0 }
0x1015   :  { %v1708_v30 = vsub.f32 %v1696_v53, %v1704_v27  ;;  %1449 = vadd.xlane.f32.xlu0 %v1448_v28 }
0x1016   :  { %v1707_v38 = vpop.xlane.xlu1 %1706 }
0x1017   :  { %v2525_v31 = vpop.eup %2524  ;;  %v1710_v32 = vmul.f32 1.442695, %v1708_v30  ;;  %v1709_v39 = vsub.f32 %v1699_v56, %v1707_v38 }
0x1018   :  { %v1451_v33 = vsel %vm415_vm13, %v2525_v31, 0.0 }
0x1019   :  { %2530 = vpow2.f32 %v1710_v32  ;;  %1452 = vadd.xlane.f32.xlu1 %v1451_v33  ;;  %v1712_v40 = vmul.f32 1.442695, %v1709_v39  ;;  %v2462_v39 = vld [vmem:[%s3142_s5 + $0x10] sm:$0xff]  }
0x101a   :  { %2397 = vmatpush3.bf16.msra.mxu1 %v2462_v39 }
0x101b   :  { %v2527_v34 = vpop.eup %2526  ;;  %2532 = vpow2.f32 %v1712_v40  ;;  %v2463_v40 = vld [vmem:[%s3142_s5 + $0x18] sm:$0xff]   ;;  %2398 = vmatprep.subr.bf16.mxu1 %v2558_v0 }
0x101c   :  { %v1581_v35 = vsel %vm411_vm12, %v2527_v34, 0.0 }
0x101d   :  { %v2529_v5 = vpop.eup %2528  ;;  %1582 = vadd.xlane.f32.xlu0 %v1581_v35 }
0x101e   :  { %v1584_v9 = vsel %vm415_vm13, %v2529_v5, 0.0  ;;  %2399 = vmatpush3.bf16.msra.mxu1 %v2463_v40 }
0x101f   :  { %1585 = vadd.xlane.f32.xlu1 %v1584_v9  ;;  %2412 = vmatprep.subr.bf16.mxu1 %v2558_v0 }
0x1023   :  { %v3013_v36 = vpop.eup %2530 }
0x1024   :  { %v1714_v37 = vsel %vm411_vm12, %v3013_v36, 0.0 }
0x1025   :  { %1715 = vadd.xlane.f32.xlu0 %v1714_v37  ;;  %v2533_v41 = vpop.eup %2532 }
0x1026   :  { %v1717_v42 = vsel %vm415_vm13, %v2533_v41, 0.0 }
0x1030   :  { %1459 = vrot.lane.b32.xlu1 %v2954_v7, %s2571_s26 }
0x1034   :  { %1592 = vrot.lane.b32.xlu1 %v2954_v7, %s2569_s1 }
0x103b   :  { %1334 = vrot.lane.b32.xlu0 %v2954_v7, %s2568_s3 }
0x1058   :  { %1718 = vadd.xlane.f32.xlu1 %v1717_v42 }
0x1069   :  { %1725 = vrot.lane.b32.xlu1 %v2954_v7, %s2570_s25 }
0x109a   :  { %v1325_v48 = vpop.xlane.xlu0 %1324 }
0x109c   :  { %v1328_v43 = vpop.xlane.xlu1 %1327 }
0x109d   :  { %2534 = vrcp.f32 %v1328_v43 }
0x109e   :  { %2536 = vrcp.f32 %v1325_v48 }
0x10a2   :  { %v1450_v50 = vpop.xlane.xlu0 %1449 }
0x10a6   :  { %v1453_v52 = vpop.xlane.xlu1 %1452 }
0x10a7   :  { %2538 = vrcp.f32 %v1453_v52  ;;  %v2535_v54 = vpop.eup %2534 }
0x10a8   :  { %2540 = vrcp.f32 %v1450_v50  ;;  %v2537_v57 = vpop.eup %2536  ;;  %v1332_v21 = vmul.f32 %v2535_v54, %v2521_v29 }
0x10a9   :  { %v1331_v63 = vmul.f32 %v2537_v57, %v2519_v11 }
0x10aa   :  { %v1583_v53 = vpop.xlane.xlu0 %1582 }
0x10ab   :  { %v1333_v2 = vpack.c.bf16 %v1332_v21, %v1331_v63  ;;  %v1795_v63 = vrot.slane %v2949_v60, %v903_v12 }
0x10ac   :  { %v1586_v55 = vpop.xlane.xlu1 %1585 }
0x10ad   :  { %2542 = vrcp.f32 %v1586_v55 }
0x10ae   :  { %2544 = vrcp.f32 %v1583_v53 }
0x10b0   :  { %v1460_v7 = vpop.permute.xlu1 %1459 }
0x10b1   :  { %v2539_v3 = vpop.eup %2538  ;;  %v1465_v4 = vsel %vm441_vm14, %v1460_v7, 0 }
0x10b2   :  { %v1716_v56 = vpop.xlane.xlu0 %1715  ;;  %v2541_v6 = vpop.eup %2540  ;;  %v1457_v47 = vmul.f32 %v2539_v3, %v2525_v31 }
0x10b3   :  { %v1456_v20 = vmul.f32 %v2541_v6, %v2523_v26  ;;  %2546 = vrcp.f32 %v1716_v56 }
0x10b4   :  { %v1593_v8 = vpop.permute.xlu1 %1592 }
0x10b5   :  { %v1458_v10 = vpack.c.bf16 %v1457_v47, %v1456_v20  ;;  %v1598_v11 = vsel %vm441_vm14, %v1593_v8, 0 }
0x10b6   :  { %v1335_v61 = vpop.permute.xlu0 %1334 }
0x10b7   :  { %v1340_v1 = vsel %vm441_vm14, %v1335_v61, 0  ;;  %v2543_v49 = vpop.eup %2542 }
0x10b8   :  { %2355 = vmatpush3.bf16.msra.mxu0 %v1340_v1  ;;  %v2545_v14 = vpop.eup %2544  ;;  %v1590_v15 = vmul.f32 %v2543_v49, %v2529_v5 }
0x10b9   :  { %2366 = vmatprep.subr.bf16.mxu0 %v2558_v0  ;;  %v1589_v16 = vmul.f32 %v2545_v14, %v2527_v34 }
0x10bb   :  { %2357 = vmatmul.mubr.msk.bf16.vlgmr.msra.gmra.mrb[32].mxu0 %vm411_vm12, %v1333_v2  ;;  %v1591_v29 = vpack.c.bf16 %v1590_v15, %v1589_v16 }
0x10bc   :  { %2367 = vmatpush3.bf16.msra.mxu0 %v1465_v4  ;;  %2368 = vmatprep.mubr.msk.bf16.mxu0 %vm2559_vm0, %v2558_v0 }
0x10bd   :  { %2378 = vmatprep.subr.bf16.mxu0 %v2558_v0  ;;  %v2547_v23 = vpop.eup %2546 }
0x10be   :  { %v1722_v25 = vmul.f32 %v2547_v23, %v3013_v36  ;;  %v2466_v23 = vld [vmem:[%s3144_s7 + $0x20] sm:$0xff]  }
0x10c3   :  { %2369 = vmatmul.mubr.msk.bf16.vlgmr.msra.gmra.mrb[36].mxu0 %vm411_vm12, %v1458_v10 }
0x10c4   :  { %2379 = vmatpush3.bf16.msra.mxu0 %v1598_v11  ;;  %2380 = vmatprep.mubr.msk.bf16.mxu0 %vm2559_vm0, %v2558_v0 }
0x10c5   :  { %2390 = vmatprep.subr.bf16.mxu0 %v2558_v0 }
0x10cb   :  { %2381 = vmatmul.mubr.msk.bf16.vlgmr.msra.gmra.mrb[40].mxu0 %vm411_vm12, %v1591_v29 }
0x10cc   :  { %2392 = vmatprep.mubr.msk.bf16.mxu0 %vm2559_vm0, %v2558_v0 }
0x10e5   :  { %v1719_v17 = vpop.xlane.xlu1 %1718 }
0x10e6   :  { %2548 = vrcp.f32 %v1719_v17 }
0x10e9   :  { %v1726_v18 = vpop.permute.xlu1 %1725 }
0x10ea   :  { %v1731_v22 = vsel %vm441_vm14, %v1726_v18, 0 }
0x10eb   :  { %2391 = vmatpush3.bf16.msra.mxu0 %v1731_v22  ;;  %v2465_v22 = vld [vmem:[%s3143_s6 + $0x18] sm:$0xff]  }
0x10ec   :  { %2404 = vmatprep.subr.bf16.mxu0 %v2558_v0 }
0x10f0   :  { %v2549_v24 = vpop.eup %2548 }
0x10f1   :  { %v1723_v26 = vmul.f32 %v2549_v24, %v2533_v41  ;;  %v2467_v24 = vld [vmem:[%s3144_s7 + $0x28] sm:$0xff]  }
0x10f3   :  { %v1724_v27 = vpack.c.bf16 %v1723_v26, %v1722_v25 }
0x10f5   :  { %2393 = vmatmul.mubr.msk.bf16.vlgmr.msra.gmra.mrb[44].mxu0 %vm411_vm12, %v1724_v27 }
0x10f6   :  { %2408 = vmatprep.mubr.msk.bf16.mxu0 %vm2559_vm0, %v2558_v0 }
0x118e   :  { %v1376_v28 = vpop.f32.mrb[32].mxu0 }
0x118f   :  { %1383 = vst.msk [vmem:[#allocation2] sm:$0xff] %vm363_vm9, %v1376_v28  ;;  %v2358_v30 = vpop.f32.mrb[33].mxu0 }
0x1190   :  { %v1379_v31 = vpop.f32.mrb[34].mxu0 }
0x1191   :  { %1384 = vst.msk [vmem:[#allocation2 + $0x8] sm:$0xf] %vm487_vm15, %v1379_v31  ;;  %v2359_v32 = vpop.f32.mrb[35].mxu0 }
0x1196   :  { %v1501_v33 = vpop.f32.mrb[36].mxu0 }
0x1197   :  { %1510 = vrot.lane.b32.xlu0 %v1501_v33, %s2572_s2  ;;  %v2370_v34 = vpop.f32.mrb[37].mxu0  ;;  %v1883_v33 = vrot.slane %v2949_v60, %v991_v45  ;;  %v2469_v45 = vld [vmem:[%s3144_s7 + $0x38] sm:$0xff]  }
0x1198   :  { %v1504_v35 = vpop.f32.mrb[38].mxu0 }
0x1199   :  { %1512 = vrot.lane.b32.xlu1 %v1504_v35, %s2572_s2  ;;  %v2371_v5 = vpop.f32.mrb[39].mxu0 }
0x119e   :  { %v1634_v9 = vpop.f32.mrb[40].mxu0 }
0x119f   :  { %1643 = vrot.lane.b32.xlu0 %v1634_v9, %s2573_s29  ;;  %v2382_v36 = vpop.f32.mrb[41].mxu0 }
0x11a0   :  { %v1637_v37 = vpop.f32.mrb[42].mxu0  ;;  %v1889_v36 = vrot.slane %v2949_v60, %v997_v51  ;;  %v1901_v51 = vrot.slane %v2949_v60, %v1008_v62 }
0x11a1   :  { %1645 = vrot.lane.b32.xlu1 %v1637_v37, %s2573_s29  ;;  %v2383_v38 = vpop.f32.mrb[43].mxu0 }
0x11c8   :  { %v1767_v41 = vpop.f32.mrb[44].mxu0 }
0x11c9   :  { %1776 = vrot.lane.b32.xlu0 %v1767_v41, %s2574_s12  ;;  %v2394_v42 = vpop.f32.mrb[45].mxu0  ;;  %v2468_v41 = vld [vmem:[%s3144_s7 + $0x30] sm:$0xff]  }
0x11ca   :  { %v1770_v43 = vpop.f32.mrb[46].mxu0 }
0x11cb   :  { %1778 = vrot.lane.b32.xlu1 %v1770_v43, %s2574_s12  ;;  %v2395_v48 = vpop.f32.mrb[47].mxu0 }
0x1209   :  { %v1511_v50 = vpop.permute.xlu0 %1510 }
0x120a   :  { %1516 = vst.msk [vmem:[#allocation2] sm:$0xff] %vm620_vm1, %v1511_v50 }
0x120b   :  { %v1513_v52 = vpop.permute.xlu1 %1512 }
0x120c   :  { %1517 = vst.msk [vmem:[#allocation2 + $0x8] sm:$0xf] %vm622_vm4, %v1513_v52 }
0x1211   :  { %v1644_v53 = vpop.permute.xlu0 %1643 }
0x1212   :  { %1649 = vst.msk [vmem:[#allocation2] sm:$0xff] %vm755_vm5, %v1644_v53 }
0x1213   :  { %v1646_v54 = vpop.permute.xlu1 %1645 }
0x1214   :  { %1650 = vst.msk [vmem:[#allocation2 + $0x8] sm:$0xf] %vm757_vm6, %v1646_v54 }
0x123b   :  { %v1777_v55 = vpop.permute.xlu0 %1776 }
0x123c   :  { %1782 = vst.msk [vmem:[#allocation2] sm:$0xff] %vm890_vm7, %v1777_v55 }
0x123d   :  { %v1779_v56 = vpop.permute.xlu1 %1778 }
0x123e   :  { %1783 = vst.msk [vmem:[#allocation2 + $0x8] sm:$0xf] %vm892_vm8, %v1779_v56 }
0x1243   :  { %v1784_v57 = vld [vmem:[#allocation2] sm:$0xff] }
0x1245   :  { %v1785_v21 = vld [vmem:[#allocation2 + $0x8] sm:$0xf] }
0x1246   :  { %v1786_v61 = vpack.c.bf16 %v1785_v21, %v1784_v57 }
0x1248   :  { %2401 = vmatmul.mubr.msk.bf16.vlgmr.msra.gmra.mrb[44].mxu1 %vm114_vm2, %v1786_v61 }
0x1249   :  { %2420 = vmatprep.mubr.msk.bf16.mxu1 %vm2559_vm0, %v2558_v0  ;;  %2413 = vmatpush3.bf16.msra.mxu1 %v2466_v23  ;;  %v2079_v23 = vrot.slane %v2949_v60, %v1186_v46 }
0x124a   :  { %2414 = vmatprep.subr.bf16.mxu1 %v2558_v0 }
0x124d   :  { %2415 = vmatpush3.bf16.msra.mxu1 %v2467_v24 }
0x124e   :  { %2416 = vmatprep.subr.bf16.mxu1 %v2558_v0 }
0x1251   :  { %2417 = vmatpush3.bf16.msra.mxu1 %v2468_v41 }
0x1252   :  { %2418 = vmatprep.subr.bf16.mxu1 %v2558_v0 }
0x1255   :  { %2419 = vmatpush3.bf16.msra.mxu1 %v2469_v45 }
0x131b   :  { %v1845_v1 = vpop.f32.mrb[44].mxu1 }
0x131c   :  { %v1846_v7 = vadd.f32 %v1845_v1, %v1795_v63  ;;  %v2402_v2 = vpop.f32.mrb[45].mxu1 }
0x131d   :  { %v1848_v3 = vpop.f32.mrb[46].mxu1 }
0x131e   :  { %v1849_v4 = vadd.f32 %v1848_v3, %v1795_v63  ;;  %v2403_v6 = vpop.f32.mrb[47].mxu1  ;;  %v1852_v47 = vadd.f32 %v1846_v7, %v2927_v58 }
0x1320   :  { %v1854_v20 = vsel %vm114_vm2, %v1852_v47, 0.0  ;;  %v1853_v8 = vadd.f32 %v1849_v4, %v2929_v59  ;;  %v2464_v59 = vld [vmem:[%s3143_s6 + $0x10] sm:$0xff]  }
0x1321   :  { %1855 = vadd.xlane.f32.xlu0 %v1854_v20  ;;  %2405 = vmatpush3.bf16.msra.mxu0 %v2464_v59  ;;  %v2073_v59 = vrot.slane %v2949_v60, %v1180_v44 }
0x1322   :  { %v1857_v10 = vsel %vm118_vm3, %v1853_v8, 0.0  ;;  %2406 = vmatprep.subr.bf16.mxu0 %v2558_v0  ;;  %v1973_v0 = vrot.slane %v2949_v60, %v1079_v13 }
0x1323   :  { %1858 = vadd.xlane.f32.xlu1 %v1857_v10 }
0x1325   :  { %2407 = vmatpush3.bf16.msra.mxu0 %v2465_v22 }
0x13ae   :  { %v1856_v49 = vpop.xlane.xlu0 %1855 }
0x13af   :  { %v1860_v11 = vmul.f32 0.03125, %v1856_v49 }
0x13b0   :  { %v1859_v14 = vpop.xlane.xlu1 %1858 }
0x13b1   :  { %v1862_v12 = vsub.f32 %v1852_v47, %v1860_v11  ;;  %v1861_v15 = vmul.f32 0.03125, %v1859_v14 }
0x13b3   :  { %v1863_v16 = vsub.f32 %v1853_v8, %v1861_v15  ;;  %v1864_v29 = vmul.f32 %v1862_v12, %v1862_v12 }
0x13b5   :  { %v1866_v17 = vsel %vm114_vm2, %v1864_v29, 0.0  ;;  %v1865_v18 = vmul.f32 %v1863_v16, %v1863_v16 }
0x13b6   :  { %1867 = vadd.xlane.f32.xlu0 %v1866_v17 }
0x13b7   :  { %v1869_v58 = vsel %vm118_vm3, %v1865_v18, 0.0 }
0x13ba   :  { %1870 = vadd.xlane.f32.xlu0 %v1869_v58 }
0x1443   :  { %v1868_v25 = vpop.xlane.xlu0 %1867 }
0x1444   :  { %v1872_v26 = vmul.f32 0.03125, %v1868_v25 }
0x1446   :  { %v1874_v27 = vadd.f32 1e-05, %v1872_v26 }
0x1447   :  { %v1871_v28 = vpop.xlane.xlu0 %1870 }
0x1448   :  { %2550 = vrsqrt.f32 %v1874_v27  ;;  %v1873_v30 = vmul.f32 0.03125, %v1871_v28 }
0x144a   :  { %v1875_v31 = vadd.f32 1e-05, %v1873_v30 }
0x144c   :  { %2552 = vrsqrt.f32 %v1875_v31 }
0x1452   :  { %v2551_v32 = vpop.eup %2550 }
0x1453   :  { %v1878_v34 = vmul.f32 %v2551_v32, %v1862_v12 }
0x1455   :  { %v1884_v5 = vmul.f32 %v1883_v33, %v1878_v34 }
0x1456   :  { %v2553_v35 = vpop.eup %2552 }
0x1457   :  { %v1879_v9 = vmul.f32 %v2553_v35, %v1863_v16  ;;  %v1890_v38 = vadd.f32 %v1889_v36, %v1884_v5 }
0x1459   :  { %v1885_v37 = vmul.f32 %v1883_v33, %v1879_v9 }
0x145b   :  { %v1891_v39 = vadd.f32 %v1889_v36, %v1885_v37 }
0x145d   :  { %v1892_v40 = vpack.c.bf16 %v1891_v39, %v1890_v38 }
0x145f   :  { %2409 = vmatmul.mubr.msk.bf16.vlgmr.msra.gmra.mrb[48].mxu0 %vm114_vm2, %v1892_v40 }
0x1532   :  { %v1951_v42 = vpop.f32.mrb[48].mxu0 }
0x1533   :  { %v1952_v43 = vadd.f32 %v1951_v42, %v1901_v51  ;;  %v2410_v48 = vpop.f32.mrb[49].mxu0 }
0x1534   :  { %v1954_v50 = vpop.f32.mrb[50].mxu0 }
0x1535   :  { %v1955_v52 = vadd.f32 %v1954_v50, %v1901_v51  ;;  %v2411_v53 = vpop.f32.mrb[51].mxu0  ;;  %v1958_v54 = vmax.f32 %v1952_v43, 0.0 }
0x1537   :  { %v1959_v55 = vmax.f32 %v1955_v52, 0.0 }
0x1539   :  { %v1960_v56 = vpack.c.bf16 %v1959_v55, %v1958_v54 }
0x153b   :  { %2421 = vmatmul.mubr.msk.bf16.vlgmr.msra.gmra.mrb[48].mxu1 %vm1105_vm10, %v1960_v56 }
0x160e   :  { %v2035_v57 = vpop.f32.mrb[48].mxu1 }
0x160f   :  { %v2036_v21 = vadd.f32 %v2035_v57, %v1973_v0  ;;  %v2422_v61 = vpop.f32.mrb[49].mxu1 }
0x1610   :  { %v2038_v63 = vpop.f32.mrb[50].mxu1 }
0x1611   :  { %v2039_v62 = vadd.f32 %v2038_v63, %v1973_v0  ;;  %v2423_v1 = vpop.f32.mrb[51].mxu1  ;;  %v2042_v7 = vadd.f32 %v2036_v21, %v1890_v38 }
0x1613   :  { %v2044_v2 = vsel %vm114_vm2, %v2042_v7, 0.0  ;;  %v2043_v3 = vadd.f32 %v2039_v62, %v1891_v39 }
0x1614   :  { %2045 = vadd.xlane.f32.xlu0 %v2044_v2 }
0x1615   :  { %v2047_v4 = vsel %vm118_vm3, %v2043_v3, 0.0 }
0x1616   :  { %2048 = vadd.xlane.f32.xlu1 %v2047_v4 }
0x16a1   :  { %v2046_v6 = vpop.xlane.xlu0 %2045 }
0x16a2   :  { %v2050_v47 = vmul.f32 0.03125, %v2046_v6 }
0x16a3   :  { %v2049_v20 = vpop.xlane.xlu1 %2048 }
0x16a4   :  { %v2052_v8 = vsub.f32 %v2042_v7, %v2050_v47  ;;  %v2051_v10 = vmul.f32 0.03125, %v2049_v20 }
0x16a6   :  { %v2053_v13 = vsub.f32 %v2043_v3, %v2051_v10  ;;  %v2054_v49 = vmul.f32 %v2052_v8, %v2052_v8 }
0x16a8   :  { %v2056_v11 = vsel %vm114_vm2, %v2054_v49, 0.0  ;;  %v2055_v14 = vmul.f32 %v2053_v13, %v2053_v13 }
0x16a9   :  { %2057 = vadd.xlane.f32.xlu0 %v2056_v11 }
0x16aa   :  { %v2059_v12 = vsel %vm118_vm3, %v2055_v14, 0.0 }
0x16ab   :  { %2060 = vadd.xlane.f32.xlu1 %v2059_v12 }
0x1736   :  { %v2058_v15 = vpop.xlane.xlu0 %2057 }
0x1737   :  { %v2062_v16 = vmul.f32 0.03125, %v2058_v15 }
0x1738   :  { %v2061_v29 = vpop.xlane.xlu1 %2060 }
0x1739   :  { %v2064_v17 = vadd.f32 1e-05, %v2062_v16  ;;  %v2063_v18 = vmul.f32 0.03125, %v2061_v29 }
0x173b   :  { %2554 = vrsqrt.f32 %v2064_v17  ;;  %v2065_v58 = vadd.f32 1e-05, %v2063_v18 }
0x173d   :  { %2556 = vrsqrt.f32 %v2065_v58 }
0x1745   :  { %v2555_v22 = vpop.eup %2554 }
0x1746   :  { %v2068_v24 = vmul.f32 %v2555_v22, %v2052_v8 }
0x1747   :  { %v2557_v25 = vpop.eup %2556 }
0x1748   :  { %v2074_v26 = vmul.f32 %v2073_v59, %v2068_v24  ;;  %v2069_v27 = vmul.f32 %v2557_v25, %v2053_v13 }
0x174a   :  { %v2080_v28 = vadd.f32 %v2079_v23, %v2074_v26  ;;  %v2075_v30 = vmul.f32 %v2073_v59, %v2069_v27 }
0x174c   :  { %2169 = vst.msk [vmem:[%s3145_s9 + $0x10] sm:$0xff] %vm114_vm2, %v2080_v28  ;;  %v2081_v31 = vadd.f32 %v2079_v23, %v2075_v30 }
0x174e   :  { %2170 = vst.msk [vmem:[%s3145_s9 + $0x18] sm:$0xf] %vm118_vm3, %v2081_v31 }

</bundles_post_ra>
